<compile_context>
chip_gen: v7x
topology: tpu7x:2x2x1
jax: 0.10.0
libtpu: 0.0.40
codegen_flags: <defaults>
</compile_context>

<pallas_src>
import functools

import jax
import jax.numpy as jnp
from jax.experimental import pallas as pl
from jax.experimental.pallas import tpu as pltpu

_LANE = 128
_SUBLANE = 8
_GATE_ORDER = (0, 1, 3, 2)      # torch packs (i, f, g, o); the kernel uses (i, f, o, g)


def _round_up(x, m):
    return (x + m - 1) // m * m


def _pack_gates(w, H, Hp):
    """(..., 4H) torch gate layout -> (..., 4Hp) kernel layout (i, f, o, g), each gate
    zero-padded from H to Hp columns."""
    parts = []
    for k in _GATE_ORDER:
        g = w[..., k * H:(k + 1) * H]
        pad = [(0, 0)] * (w.ndim - 1) + [(0, Hp - H)]
        parts.append(jnp.pad(g, pad))
    return jnp.concatenate(parts, axis=-1)


def _unpack_gates(w, H, Hp):
    """Inverse of _pack_gates: (..., 4Hp) kernel layout -> (..., 4H) torch (i, f, g, o)."""
    slots = [w[..., s * Hp:s * Hp + H] for s in range(4)]   # i, f, o, g
    return jnp.concatenate([slots[0], slots[1], slots[3], slots[2]], axis=-1)


# ---------------------------------------------------------------------------
# Fused kernel: per-block input projection + time-blocked recurrence + final FC.
# ---------------------------------------------------------------------------
def _lstm_fused_kernel(x_ref, w_ih_ref, b_ref, w_hh_ref, w_fc_ref, b_fc_ref,
                       out_ref, xg_scr, h_scr, c_scr, *, hidden_pad, t_blk, b_blk):
    Hp = hidden_pad
    tb = pl.program_id(1)

    @pl.when(tb == 0)
    def _():
        h_scr[...] = jnp.zeros_like(h_scr)
        c_scr[...] = jnp.zeros_like(c_scr)

    # Fused input projection for the whole time block: one MXU-friendly matmul
    # (bf16 operands, f32 accumulation), bias folded in.  No HBM intermediate.
    in_sz = x_ref.shape[-1]
    x_blk = x_ref[...].reshape(t_blk * b_blk, in_sz)
    xg_scr[...] = (jnp.dot(x_blk, w_ih_ref[...], preferred_element_type=jnp.float32)
                   + b_ref[...])

    def step(i, carry):
        h, c = carry
        row = pl.multiple_of(i * b_blk, _SUBLANE)
        gates = (xg_scr[pl.ds(row, b_blk), :]
                 + jnp.dot(h.astype(jnp.bfloat16), w_hh_ref[...],
                           preferred_element_type=jnp.float32))
        # Gate layout (i, f, o, g): one contiguous sigmoid over 3*Hp lanes, tanh on the rest.
        sig = jax.nn.sigmoid(gates[:, 0:3 * Hp])
        i_g = sig[:, 0 * Hp:1 * Hp]
        f_g = sig[:, 1 * Hp:2 * Hp]
        o_g = sig[:, 2 * Hp:3 * Hp]
        g_g = jnp.tanh(gates[:, 3 * Hp:4 * Hp])
        c = f_g * c + i_g * g_g                # f32 elementwise (v5e has no bf16 VPU/EUP)
        h = o_g * jnp.tanh(c)
        return h, c

    h, c = jax.lax.fori_loop(0, t_blk, step, (h_scr[...], c_scr[...]),
                             unroll=(True if t_blk <= 16 else 8))
    h_scr[...] = h
    c_scr[...] = c

    @pl.when(tb == pl.num_programs(1) - 1)
    def _():
        # Final Linear(H, 1): VPU multiply + lane reduction instead of an N=1 MXU matmul.
        fc = jnp.sum(h * w_fc_ref[...], axis=-1, keepdims=True) + b_fc_ref[0, 0]
        # Lane-dense (B_BLK, 128) output (unmasked stores); the wrapper slices [:, :1].
        out_ref[...] = jnp.broadcast_to(fc, out_ref.shape)


# ---------------------------------------------------------------------------
# Block-size / VMEM sizing (generation-aware).
# ---------------------------------------------------------------------------
def _pick_batch_block(B_pad, cap=128):
    """Largest multiple-of-8 divisor of B_pad that is <= min(B_pad//2, cap): gives >= 2 batch
    blocks when possible so v7x's two TensorCores both get work; bounds vreg pressure too."""
    if B_pad <= _SUBLANE:
        return B_pad
    cand = min(B_pad // 2, cap) // _SUBLANE * _SUBLANE
    while cand >= _SUBLANE:
        if B_pad % cand == 0:
            return cand
        cand -= _SUBLANE
    return B_pad


def _block_cost_bytes(t_blk, b_blk, in_sz, Hp):
    x_blk = 2 * t_blk * b_blk * in_sz * 2            # double-buffered bf16 input block
    xg = t_blk * b_blk * 4 * Hp * 4                  # f32 gate-preactivation scratch
    weights = (in_sz * 4 * Hp * 2 + 4 * Hp * 4       # W_ih bf16 + fused bias f32
               + Hp * 4 * Hp * 2 + Hp * 4)           # W_hh bf16 + W_fc f32
    carry = 2 * b_blk * Hp * 4                       # h / c scratch
    out = 2 * b_blk * _LANE * 4                      # output block
    return x_blk + xg + weights + carry + out


def _pick_time_block(T, b_blk, in_sz, Hp, budget, cap=128):
    """Largest divisor of T (<= cap) whose per-grid-step working set fits the VMEM budget."""
    best = 1
    for cand in range(1, min(T, cap) + 1):
        if T % cand == 0 and _block_cost_bytes(cand, b_blk, in_sz, Hp) <= budget:
            best = cand
    return best


# ---------------------------------------------------------------------------
# Wrapper
# ---------------------------------------------------------------------------
def lstm_model_forward(x, params):
    """x: (B, T, input_size) float32 -> (B, 1) float32, matching LSTMModel.forward."""
    B, T, in_sz = x.shape
    Hp = params["hidden_pad"]
    B_pad = max(_SUBLANE, _round_up(B, _SUBLANE))

    # Generation-aware VMEM budget (v5e/v6e: 128 MiB, v7x: 64 MiB per core).
    try:
        vmem_cap = int(pltpu.get_tpu_info().vmem_capacity_bytes)
    except Exception:
        vmem_cap = 64 << 20   # conservative fallback (v7x per-core VMEM)

    B_BLK = _pick_batch_block(B_pad)
    T_BLK = _pick_time_block(T, B_BLK, in_sz, Hp, budget=int(0.55 * vmem_cap))
    n_bblk = B_pad // B_BLK
    n_tblk = T // T_BLK

    cost = _block_cost_bytes(T_BLK, B_BLK, in_sz, Hp)
    vmem_limit = min(max(int(1.5 * cost), 32 << 20), int(0.75 * vmem_cap))
    vmem_limit = int(min(max(vmem_limit, cost + (4 << 20)), vmem_cap))

    # Pad batch rows with zeros (rows never mix; padded rows are dropped at the end),
    # cast the MXU operand to bf16 and go time-major so time blocks are leading-axis slabs.
    x_pad = jnp.pad(x, ((0, B_pad - B), (0, 0), (0, 0)))
    x_tm = jnp.transpose(x_pad, (1, 0, 2)).astype(jnp.bfloat16)      # (T, B_pad, I)

    grid_spec = pltpu.PrefetchScalarGridSpec(
        num_scalar_prefetch=0,
        grid=(n_bblk, n_tblk),
        in_specs=[
            # input block: batch-blocked + time-blocked
            pl.BlockSpec((T_BLK, B_BLK, in_sz), lambda bb, tb: (tb, bb, 0)),
            # loop-invariant weights: single-buffered
            pl.BlockSpec((in_sz, 4 * Hp), lambda bb, tb: (0, 0),
                         pipeline_mode=pl.Buffered(1)),
            pl.BlockSpec((1, 4 * Hp), lambda bb, tb: (0, 0),
                         pipeline_mode=pl.Buffered(1)),
            pl.BlockSpec((Hp, 4 * Hp), lambda bb, tb: (0, 0),
                         pipeline_mode=pl.Buffered(1)),
            pl.BlockSpec((1, Hp), lambda bb, tb: (0, 0),
                         pipeline_mode=pl.Buffered(1)),
            # true scalar lives in SMEM
            pl.BlockSpec(memory_space=pltpu.MemorySpace.SMEM),
        ],
        out_specs=pl.BlockSpec((B_BLK, _LANE), lambda bb, tb: (bb, 0)),
        scratch_shapes=[
            pltpu.VMEM((T_BLK * B_BLK, 4 * Hp), jnp.float32),   # fused gate preactivations
            pltpu.VMEM((B_BLK, Hp), jnp.float32),               # h carry
            pltpu.VMEM((B_BLK, Hp), jnp.float32),               # c carry
        ],
    )

    out = pl.pallas_call(
        functools.partial(_lstm_fused_kernel, hidden_pad=Hp, t_blk=T_BLK, b_blk=B_BLK),
        out_shape=jax.ShapeDtypeStruct((B_pad, _LANE), jnp.float32),
        grid_spec=grid_spec,
        compiler_params=pltpu.CompilerParams(
            dimension_semantics=("parallel", "arbitrary"),   # batch parallel, time sequential
            vmem_limit_bytes=vmem_limit),
    )(x_tm, params["w_ih"], params["b"], params["w_hh"], params["w_fc"], params["b_fc"])

    return out[:B, :1]


# ---------------------------------------------------------------------------
# Parameters (PyTorch-style init, then padded / bf16 kernel layouts)
# ---------------------------------------------------------------------------
def init_params(key, input_size, hidden_size):
    """Deterministic init mimicking PyTorch's U(-1/sqrt(H), 1/sqrt(H))."""
    H = hidden_size
    Hp = _round_up(H, _LANE)      # lane-aligned hidden size (see padding invariant in header)
    k = 1.0 / jnp.sqrt(jnp.float32(H))
    keys = jax.random.split(key, 6)
    u = lambda kk, shape: jax.random.uniform(kk, shape, jnp.float32, -k, k)

    w_ih_t = u(keys[0], (4 * H, input_size))   # torch layout (4H, I)
    w_hh_t = u(keys[1], (4 * H, H))            # torch layout (4H, H)
    b_ih = u(keys[2], (4 * H,))
    b_hh = u(keys[3], (4 * H,))
    w_fc_t = u(keys[4], (1, H))                # torch layout (1, H)
    b_fc = u(keys[5], (1,))

    w_ih = _pack_gates(w_ih_t.T, H, Hp).astype(jnp.bfloat16)            # (I, 4Hp) bf16
    w_hh = jnp.pad(_pack_gates(w_hh_t.T, H, Hp),
                   ((0, Hp - H), (0, 0))).astype(jnp.bfloat16)          # (Hp, 4Hp) bf16
    b = _pack_gates((b_ih + b_hh).reshape(1, 4 * H), H, Hp)             # (1, 4Hp) f32
    w_fc = jnp.pad(w_fc_t, ((0, 0), (0, Hp - H)))                       # (1, Hp) f32

    return {
        "hidden_size": H, "hidden_pad": Hp,
        "w_ih": w_ih, "w_hh": w_hh, "b": b,
        "w_fc": w_fc, "b_fc": b_fc.reshape(1, 1),
    }


# ---------------------------------------------------------------------------
# Pure-JAX reference (mirrors the kernel's bf16 matmul-operand rounding so the comparison
# isolates the Pallas mechanics; vs. a pure-f32 torch run the usual bf16-weight error applies).
# ---------------------------------------------------------------------------
def lstm_model_reference(x, params):
    H, Hp = params["hidden_size"], params["hidden_pad"]
    w_ih = _unpack_gates(params["w_ih"].astype(jnp.float32), H, Hp)          # (I, 4H)
    w_hh = _unpack_gates(params["w_hh"].astype(jnp.float32)[:H], H, Hp)      # (H, 4H)
    b = _unpack_gates(params["b"], H, Hp)                                    # (1, 4H)
    w_fc = params["w_fc"][:, :H]                                             # (1, H)
    b_fc = params["b_fc"]                                                    # (1, 1)

    B = x.shape[0]
    xb = x.astype(jnp.bfloat16).astype(jnp.float32)

    def step(carry, x_t):
        h, c = carry
        hb = h.astype(jnp.bfloat16).astype(jnp.float32)
        gates = x_t @ w_ih + hb @ w_hh + b
        i_g = jax.nn.sigmoid(gates[:, 0 * H:1 * H])
        f_g = jax.nn.sigmoid(gates[:, 1 * H:2 * H])
        g_g = jnp.tanh(gates[:, 2 * H:3 * H])
        o_g = jax.nn.sigmoid(gates[:, 3 * H:4 * H])
        c_new = f_g * c + i_g * g_g
        h_new = o_g * jnp.tanh(c_new)
        return (h_new, c_new), None

    init = (jnp.zeros((B, H), jnp.float32), jnp.zeros((B, H), jnp.float32))
    (h_T, _), _ = jax.lax.scan(step, init, jnp.transpose(xb, (1, 0, 2)))
    return jnp.sum(h_T * w_fc, axis=-1, keepdims=True) + b_fc


if __name__ == "__main__":
    B, T, INPUT, HIDDEN = 2, 8, 16, 32
    key = jax.random.PRNGKey(0)
    kx, kp = jax.random.split(key)
    x = jax.random.normal(kx, (B, T, INPUT), jnp.float32)
    params = init_params(kp, INPUT, HIDDEN)

    out = jax.block_until_ready(lstm_model_forward(x, params))
    ref = jax.block_until_ready(lstm_model_reference(x, params))

    assert out.shape == (B, 1), out.shape
    assert jnp.allclose(out, ref, atol=1e-3, rtol=1e-3), (out, ref)

    print("KERNEL_OK")
</pallas_src>

<mosaic_0001>
module attributes {stable_mosaic.version = 11 : i64} {
  func.func @_lstm_fused_kernel(%arg0: i32, %arg1: i32, %arg2: memref<8x8x16xbf16, #tpu.memory_space<vmem>>, %arg3: memref<16x512xbf16, #tpu.memory_space<vmem>>, %arg4: memref<1x512xf32, #tpu.memory_space<vmem>>, %arg5: memref<128x512xbf16, #tpu.memory_space<vmem>>, %arg6: memref<1x128xf32, #tpu.memory_space<vmem>>, %arg7: memref<1x1xf32, #tpu.memory_space<smem>>, %arg8: memref<8x128xf32, #tpu.memory_space<vmem>>, %arg9: memref<64x512xf32, #tpu.memory_space<vmem>>, %arg10: memref<8x128xf32, #tpu.memory_space<vmem>>, %arg11: memref<8x128xf32, #tpu.memory_space<vmem>>) attributes {dimension_semantics = [#tpu.dimension_semantics<parallel>, #tpu.dimension_semantics<arbitrary>], iteration_bounds = array<i64: 1, 1>, scalar_prefetch = 0 : i64, scratch_operands = 3 : i64, tpu.core_type = #tpu.core_type<tc>, window_params = [{transform_indices = @transform_0, window_bounds = array<i64: 8, 8, 16>}, {pipeline_mode = #tpu.pipeline_mode<synchronous>, transform_indices = @transform_1, window_bounds = array<i64: 16, 512>}, {pipeline_mode = #tpu.pipeline_mode<synchronous>, transform_indices = @transform_2, window_bounds = array<i64: 1, 512>}, {pipeline_mode = #tpu.pipeline_mode<synchronous>, transform_indices = @transform_3, window_bounds = array<i64: 128, 512>}, {pipeline_mode = #tpu.pipeline_mode<synchronous>, transform_indices = @transform_4, window_bounds = array<i64: 1, 128>}, {transform_indices = @transform_5, window_bounds = array<i64: 1, 1>}, {transform_indices = @transform_6, window_bounds = array<i64: 8, 128>}]} {
    %c0_i32 = arith.constant 0 : i32
    %0 = arith.cmpi eq, %arg1, %c0_i32 : i32
    %1 = arith.extui %0 : i1 to i32
    %c0_i32_0 = arith.constant 0 : i32
    %2 = arith.cmpi ne, %1, %c0_i32_0 : i32
    scf.if %2 {
      %cst_68 = arith.constant 0.000000e+00 : f32
      %210 = vector.broadcast %cst_68 : f32 to vector<8x128xf32>
      %c0_69 = arith.constant 0 : index
      %c0_70 = arith.constant 0 : index
      %211 = vector.load %arg10[%c0_69, %c0_70] : memref<8x128xf32, #tpu.memory_space<vmem>>, vector<8x128xf32>
      tpu.vector_store %arg10[%c0_69, %c0_70], %210 {strides = array<i32>} : memref<8x128xf32, #tpu.memory_space<vmem>>, vector<8x128xf32>,
      %cst_71 = arith.constant 0.000000e+00 : f32
      %212 = vector.broadcast %cst_71 : f32 to vector<8x128xf32>
      %c0_72 = arith.constant 0 : index
      %c0_73 = arith.constant 0 : index
      %213 = vector.load %arg11[%c0_72, %c0_73] : memref<8x128xf32, #tpu.memory_space<vmem>>, vector<8x128xf32>
      tpu.vector_store %arg11[%c0_72, %c0_73], %212 {strides = array<i32>} : memref<8x128xf32, #tpu.memory_space<vmem>>, vector<8x128xf32>,
    } else {
    }
    %c0 = arith.constant 0 : index
    %c0_1 = arith.constant 0 : index
    %c0_2 = arith.constant 0 : index
    %3 = vector.load %arg2[%c0, %c0_1, %c0_2] : memref<8x8x16xbf16, #tpu.memory_space<vmem>>, vector<8x8x16xbf16>
    %4 = vector.shape_cast %3 : vector<8x8x16xbf16> to vector<64x16xbf16>
    %c0_3 = arith.constant 0 : index
    %c0_4 = arith.constant 0 : index
    %5 = vector.load %arg3[%c0_3, %c0_4] : memref<16x512xbf16, #tpu.memory_space<vmem>>, vector<16x512xbf16>
    %cst = arith.constant dense<0.000000e+00> : vector<64x512xf32>
    %6 = tpu.matmul %4, %5, %cst {dimension_numbers = #tpu.dot_dimension_numbers<[1], [0], [0], [1], [0, 0, 1, 1], [], []>} : vector<64x16xbf16>, vector<16x512xbf16>, vector<64x512xf32> -> vector<64x512xf32>
    %c0_5 = arith.constant 0 : index
    %c0_6 = arith.constant 0 : index
    %7 = vector.load %arg4[%c0_5, %c0_6] : memref<1x512xf32, #tpu.memory_space<vmem>>, vector<1x512xf32>
    %8 = vector.broadcast %7 : vector<1x512xf32> to vector<64x512xf32>
    %9 = arith.addf %6, %8 : vector<64x512xf32>
    %c0_7 = arith.constant 0 : index
    %c0_8 = arith.constant 0 : index
    %10 = vector.load %arg9[%c0_7, %c0_8] : memref<64x512xf32, #tpu.memory_space<vmem>>, vector<64x512xf32>
    tpu.vector_store %arg9[%c0_7, %c0_8], %9 {strides = array<i32>} : memref<64x512xf32, #tpu.memory_space<vmem>>, vector<64x512xf32>,
    %c0_9 = arith.constant 0 : index
    %c0_10 = arith.constant 0 : index
    %11 = vector.load %arg10[%c0_9, %c0_10] : memref<8x128xf32, #tpu.memory_space<vmem>>, vector<8x128xf32>
    %c0_11 = arith.constant 0 : index
    %c0_12 = arith.constant 0 : index
    %12 = vector.load %arg11[%c0_11, %c0_12] : memref<8x128xf32, #tpu.memory_space<vmem>>, vector<8x128xf32>
    %c0_i32_13 = arith.constant 0 : i32
    %c8_i32 = arith.constant 8 : i32
    %13 = arith.muli %c0_i32_13, %c8_i32 : i32
    %14 = tpu.assume_multiple %13, 8 : i32
    %15 = arith.index_cast %14 : i32 to index
    %c0_14 = arith.constant 0 : index
    %16 = vector.load %arg9[%15, %c0_14] : memref<64x512xf32, #tpu.memory_space<vmem>>, vector<8x512xf32>
    %17 = arith.truncf %11 : vector<8x128xf32> to vector<8x128xbf16>
    %c0_15 = arith.constant 0 : index
    %c0_16 = arith.constant 0 : index
    %18 = vector.load %arg5[%c0_15, %c0_16] : memref<128x512xbf16, #tpu.memory_space<vmem>>, vector<128x512xbf16>
    %cst_17 = arith.constant dense<0.000000e+00> : vector<8x512xf32>
    %19 = tpu.matmul %17, %18, %cst_17 {dimension_numbers = #tpu.dot_dimension_numbers<[1], [0], [0], [1], [0, 0, 1, 1], [], []>} : vector<8x128xbf16>, vector<128x512xbf16>, vector<8x512xf32> -> vector<8x512xf32>
    %20 = arith.addf %16, %19 : vector<8x512xf32>
    %21 = vector.extract_strided_slice %20 {offsets = [0, 0], sizes = [8, 384], strides = [1, 1]} : vector<8x512xf32> to vector<8x384xf32>
    %22 = arith.negf %21 : vector<8x384xf32>
    %23 = math.exp %22 : vector<8x384xf32>
    %cst_18 = arith.constant 1.000000e+00 : f32
    %24 = vector.broadcast %cst_18 : f32 to vector<8x384xf32>
    %25 = arith.addf %24, %23 : vector<8x384xf32>
    %26 = arith.divf %24, %25 : vector<8x384xf32>
    %27 = vector.extract_strided_slice %26 {offsets = [0, 0], sizes = [8, 128], strides = [1, 1]} : vector<8x384xf32> to vector<8x128xf32>
    %28 = vector.extract_strided_slice %26 {offsets = [0, 128], sizes = [8, 128], strides = [1, 1]} : vector<8x384xf32> to vector<8x128xf32>
    %29 = vector.extract_strided_slice %26 {offsets = [0, 256], sizes = [8, 128], strides = [1, 1]} : vector<8x384xf32> to vector<8x128xf32>
    %30 = vector.extract_strided_slice %20 {offsets = [0, 384], sizes = [8, 128], strides = [1, 1]} : vector<8x512xf32> to vector<8x128xf32>
    %31 = math.tanh %30 : vector<8x128xf32>
    %32 = arith.mulf %28, %12 : vector<8x128xf32>
    %33 = arith.mulf %27, %31 : vector<8x128xf32>
    %34 = arith.addf %32, %33 : vector<8x128xf32>
    %35 = math.tanh %34 : vector<8x128xf32>
    %36 = arith.mulf %29, %35 : vector<8x128xf32>
    %c1_i32 = arith.constant 1 : i32
    %c8_i32_19 = arith.constant 8 : i32
    %37 = arith.muli %c1_i32, %c8_i32_19 : i32
    %38 = tpu.assume_multiple %37, 8 : i32
    %39 = arith.index_cast %38 : i32 to index
    %c0_20 = arith.constant 0 : index
    %40 = vector.load %arg9[%39, %c0_20] : memref<64x512xf32, #tpu.memory_space<vmem>>, vector<8x512xf32>
    %41 = arith.truncf %36 : vector<8x128xf32> to vector<8x128xbf16>
    %c0_21 = arith.constant 0 : index
    %c0_22 = arith.constant 0 : index
    %42 = vector.load %arg5[%c0_21, %c0_22] : memref<128x512xbf16, #tpu.memory_space<vmem>>, vector<128x512xbf16>
    %cst_23 = arith.constant dense<0.000000e+00> : vector<8x512xf32>
    %43 = tpu.matmul %41, %42, %cst_23 {dimension_numbers = #tpu.dot_dimension_numbers<[1], [0], [0], [1], [0, 0, 1, 1], [], []>} : vector<8x128xbf16>, vector<128x512xbf16>, vector<8x512xf32> -> vector<8x512xf32>
    %44 = arith.addf %40, %43 : vector<8x512xf32>
    %45 = vector.extract_strided_slice %44 {offsets = [0, 0], sizes = [8, 384], strides = [1, 1]} : vector<8x512xf32> to vector<8x384xf32>
    %46 = arith.negf %45 : vector<8x384xf32>
    %47 = math.exp %46 : vector<8x384xf32>
    %cst_24 = arith.constant 1.000000e+00 : f32
    %48 = vector.broadcast %cst_24 : f32 to vector<8x384xf32>
    %49 = arith.addf %48, %47 : vector<8x384xf32>
    %50 = arith.divf %48, %49 : vector<8x384xf32>
    %51 = vector.extract_strided_slice %50 {offsets = [0, 0], sizes = [8, 128], strides = [1, 1]} : vector<8x384xf32> to vector<8x128xf32>
    %52 = vector.extract_strided_slice %50 {offsets = [0, 128], sizes = [8, 128], strides = [1, 1]} : vector<8x384xf32> to vector<8x128xf32>
    %53 = vector.extract_strided_slice %50 {offsets = [0, 256], sizes = [8, 128], strides = [1, 1]} : vector<8x384xf32> to vector<8x128xf32>
    %54 = vector.extract_strided_slice %44 {offsets = [0, 384], sizes = [8, 128], strides = [1, 1]} : vector<8x512xf32> to vector<8x128xf32>
    %55 = math.tanh %54 : vector<8x128xf32>
    %56 = arith.mulf %52, %34 : vector<8x128xf32>
    %57 = arith.mulf %51, %55 : vector<8x128xf32>
    %58 = arith.addf %56, %57 : vector<8x128xf32>
    %59 = math.tanh %58 : vector<8x128xf32>
    %60 = arith.mulf %53, %59 : vector<8x128xf32>
    %c2_i32 = arith.constant 2 : i32
    %c8_i32_25 = arith.constant 8 : i32
    %61 = arith.muli %c2_i32, %c8_i32_25 : i32
    %62 = tpu.assume_multiple %61, 8 : i32
    %63 = arith.index_cast %62 : i32 to index
    %c0_26 = arith.constant 0 : index
    %64 = vector.load %arg9[%63, %c0_26] : memref<64x512xf32, #tpu.memory_space<vmem>>, vector<8x512xf32>
    %65 = arith.truncf %60 : vector<8x128xf32> to vector<8x128xbf16>
    %c0_27 = arith.constant 0 : index
    %c0_28 = arith.constant 0 : index
    %66 = vector.load %arg5[%c0_27, %c0_28] : memref<128x512xbf16, #tpu.memory_space<vmem>>, vector<128x512xbf16>
    %cst_29 = arith.constant dense<0.000000e+00> : vector<8x512xf32>
    %67 = tpu.matmul %65, %66, %cst_29 {dimension_numbers = #tpu.dot_dimension_numbers<[1], [0], [0], [1], [0, 0, 1, 1], [], []>} : vector<8x128xbf16>, vector<128x512xbf16>, vector<8x512xf32> -> vector<8x512xf32>
    %68 = arith.addf %64, %67 : vector<8x512xf32>
    %69 = vector.extract_strided_slice %68 {offsets = [0, 0], sizes = [8, 384], strides = [1, 1]} : vector<8x512xf32> to vector<8x384xf32>
    %70 = arith.negf %69 : vector<8x384xf32>
    %71 = math.exp %70 : vector<8x384xf32>
    %cst_30 = arith.constant 1.000000e+00 : f32
    %72 = vector.broadcast %cst_30 : f32 to vector<8x384xf32>
    %73 = arith.addf %72, %71 : vector<8x384xf32>
    %74 = arith.divf %72, %73 : vector<8x384xf32>
    %75 = vector.extract_strided_slice %74 {offsets = [0, 0], sizes = [8, 128], strides = [1, 1]} : vector<8x384xf32> to vector<8x128xf32>
    %76 = vector.extract_strided_slice %74 {offsets = [0, 128], sizes = [8, 128], strides = [1, 1]} : vector<8x384xf32> to vector<8x128xf32>
    %77 = vector.extract_strided_slice %74 {offsets = [0, 256], sizes = [8, 128], strides = [1, 1]} : vector<8x384xf32> to vector<8x128xf32>
    %78 = vector.extract_strided_slice %68 {offsets = [0, 384], sizes = [8, 128], strides = [1, 1]} : vector<8x512xf32> to vector<8x128xf32>
    %79 = math.tanh %78 : vector<8x128xf32>
    %80 = arith.mulf %76, %58 : vector<8x128xf32>
    %81 = arith.mulf %75, %79 : vector<8x128xf32>
    %82 = arith.addf %80, %81 : vector<8x128xf32>
    %83 = math.tanh %82 : vector<8x128xf32>
    %84 = arith.mulf %77, %83 : vector<8x128xf32>
    %c3_i32 = arith.constant 3 : i32
    %c8_i32_31 = arith.constant 8 : i32
    %85 = arith.muli %c3_i32, %c8_i32_31 : i32
    %86 = tpu.assume_multiple %85, 8 : i32
    %87 = arith.index_cast %86 : i32 to index
    %c0_32 = arith.constant 0 : index
    %88 = vector.load %arg9[%87, %c0_32] : memref<64x512xf32, #tpu.memory_space<vmem>>, vector<8x512xf32>
    %89 = arith.truncf %84 : vector<8x128xf32> to vector<8x128xbf16>
    %c0_33 = arith.constant 0 : index
    %c0_34 = arith.constant 0 : index
    %90 = vector.load %arg5[%c0_33, %c0_34] : memref<128x512xbf16, #tpu.memory_space<vmem>>, vector<128x512xbf16>
    %cst_35 = arith.constant dense<0.000000e+00> : vector<8x512xf32>
    %91 = tpu.matmul %89, %90, %cst_35 {dimension_numbers = #tpu.dot_dimension_numbers<[1], [0], [0], [1], [0, 0, 1, 1], [], []>} : vector<8x128xbf16>, vector<128x512xbf16>, vector<8x512xf32> -> vector<8x512xf32>
    %92 = arith.addf %88, %91 : vector<8x512xf32>
    %93 = vector.extract_strided_slice %92 {offsets = [0, 0], sizes = [8, 384], strides = [1, 1]} : vector<8x512xf32> to vector<8x384xf32>
    %94 = arith.negf %93 : vector<8x384xf32>
    %95 = math.exp %94 : vector<8x384xf32>
    %cst_36 = arith.constant 1.000000e+00 : f32
    %96 = vector.broadcast %cst_36 : f32 to vector<8x384xf32>
    %97 = arith.addf %96, %95 : vector<8x384xf32>
    %98 = arith.divf %96, %97 : vector<8x384xf32>
    %99 = vector.extract_strided_slice %98 {offsets = [0, 0], sizes = [8, 128], strides = [1, 1]} : vector<8x384xf32> to vector<8x128xf32>
    %100 = vector.extract_strided_slice %98 {offsets = [0, 128], sizes = [8, 128], strides = [1, 1]} : vector<8x384xf32> to vector<8x128xf32>
    %101 = vector.extract_strided_slice %98 {offsets = [0, 256], sizes = [8, 128], strides = [1, 1]} : vector<8x384xf32> to vector<8x128xf32>
    %102 = vector.extract_strided_slice %92 {offsets = [0, 384], sizes = [8, 128], strides = [1, 1]} : vector<8x512xf32> to vector<8x128xf32>
    %103 = math.tanh %102 : vector<8x128xf32>
    %104 = arith.mulf %100, %82 : vector<8x128xf32>
    %105 = arith.mulf %99, %103 : vector<8x128xf32>
    %106 = arith.addf %104, %105 : vector<8x128xf32>
    %107 = math.tanh %106 : vector<8x128xf32>
    %108 = arith.mulf %101, %107 : vector<8x128xf32>
    %c4_i32 = arith.constant 4 : i32
    %c8_i32_37 = arith.constant 8 : i32
    %109 = arith.muli %c4_i32, %c8_i32_37 : i32
    %110 = tpu.assume_multiple %109, 8 : i32
    %111 = arith.index_cast %110 : i32 to index
    %c0_38 = arith.constant 0 : index
    %112 = vector.load %arg9[%111, %c0_38] : memref<64x512xf32, #tpu.memory_space<vmem>>, vector<8x512xf32>
    %113 = arith.truncf %108 : vector<8x128xf32> to vector<8x128xbf16>
    %c0_39 = arith.constant 0 : index
    %c0_40 = arith.constant 0 : index
    %114 = vector.load %arg5[%c0_39, %c0_40] : memref<128x512xbf16, #tpu.memory_space<vmem>>, vector<128x512xbf16>
    %cst_41 = arith.constant dense<0.000000e+00> : vector<8x512xf32>
    %115 = tpu.matmul %113, %114, %cst_41 {dimension_numbers = #tpu.dot_dimension_numbers<[1], [0], [0], [1], [0, 0, 1, 1], [], []>} : vector<8x128xbf16>, vector<128x512xbf16>, vector<8x512xf32> -> vector<8x512xf32>
    %116 = arith.addf %112, %115 : vector<8x512xf32>
    %117 = vector.extract_strided_slice %116 {offsets = [0, 0], sizes = [8, 384], strides = [1, 1]} : vector<8x512xf32> to vector<8x384xf32>
    %118 = arith.negf %117 : vector<8x384xf32>
    %119 = math.exp %118 : vector<8x384xf32>
    %cst_42 = arith.constant 1.000000e+00 : f32
    %120 = vector.broadcast %cst_42 : f32 to vector<8x384xf32>
    %121 = arith.addf %120, %119 : vector<8x384xf32>
    %122 = arith.divf %120, %121 : vector<8x384xf32>
    %123 = vector.extract_strided_slice %122 {offsets = [0, 0], sizes = [8, 128], strides = [1, 1]} : vector<8x384xf32> to vector<8x128xf32>
    %124 = vector.extract_strided_slice %122 {offsets = [0, 128], sizes = [8, 128], strides = [1, 1]} : vector<8x384xf32> to vector<8x128xf32>
    %125 = vector.extract_strided_slice %122 {offsets = [0, 256], sizes = [8, 128], strides = [1, 1]} : vector<8x384xf32> to vector<8x128xf32>
    %126 = vector.extract_strided_slice %116 {offsets = [0, 384], sizes = [8, 128], strides = [1, 1]} : vector<8x512xf32> to vector<8x128xf32>
    %127 = math.tanh %126 : vector<8x128xf32>
    %128 = arith.mulf %124, %106 : vector<8x128xf32>
    %129 = arith.mulf %123, %127 : vector<8x128xf32>
    %130 = arith.addf %128, %129 : vector<8x128xf32>
    %131 = math.tanh %130 : vector<8x128xf32>
    %132 = arith.mulf %125, %131 : vector<8x128xf32>
    %c5_i32 = arith.constant 5 : i32
    %c8_i32_43 = arith.constant 8 : i32
    %133 = arith.muli %c5_i32, %c8_i32_43 : i32
    %134 = tpu.assume_multiple %133, 8 : i32
    %135 = arith.index_cast %134 : i32 to index
    %c0_44 = arith.constant 0 : index
    %136 = vector.load %arg9[%135, %c0_44] : memref<64x512xf32, #tpu.memory_space<vmem>>, vector<8x512xf32>
    %137 = arith.truncf %132 : vector<8x128xf32> to vector<8x128xbf16>
    %c0_45 = arith.constant 0 : index
    %c0_46 = arith.constant 0 : index
    %138 = vector.load %arg5[%c0_45, %c0_46] : memref<128x512xbf16, #tpu.memory_space<vmem>>, vector<128x512xbf16>
    %cst_47 = arith.constant dense<0.000000e+00> : vector<8x512xf32>
    %139 = tpu.matmul %137, %138, %cst_47 {dimension_numbers = #tpu.dot_dimension_numbers<[1], [0], [0], [1], [0, 0, 1, 1], [], []>} : vector<8x128xbf16>, vector<128x512xbf16>, vector<8x512xf32> -> vector<8x512xf32>
    %140 = arith.addf %136, %139 : vector<8x512xf32>
    %141 = vector.extract_strided_slice %140 {offsets = [0, 0], sizes = [8, 384], strides = [1, 1]} : vector<8x512xf32> to vector<8x384xf32>
    %142 = arith.negf %141 : vector<8x384xf32>
    %143 = math.exp %142 : vector<8x384xf32>
    %cst_48 = arith.constant 1.000000e+00 : f32
    %144 = vector.broadcast %cst_48 : f32 to vector<8x384xf32>
    %145 = arith.addf %144, %143 : vector<8x384xf32>
    %146 = arith.divf %144, %145 : vector<8x384xf32>
    %147 = vector.extract_strided_slice %146 {offsets = [0, 0], sizes = [8, 128], strides = [1, 1]} : vector<8x384xf32> to vector<8x128xf32>
    %148 = vector.extract_strided_slice %146 {offsets = [0, 128], sizes = [8, 128], strides = [1, 1]} : vector<8x384xf32> to vector<8x128xf32>
    %149 = vector.extract_strided_slice %146 {offsets = [0, 256], sizes = [8, 128], strides = [1, 1]} : vector<8x384xf32> to vector<8x128xf32>
    %150 = vector.extract_strided_slice %140 {offsets = [0, 384], sizes = [8, 128], strides = [1, 1]} : vector<8x512xf32> to vector<8x128xf32>
    %151 = math.tanh %150 : vector<8x128xf32>
    %152 = arith.mulf %148, %130 : vector<8x128xf32>
    %153 = arith.mulf %147, %151 : vector<8x128xf32>
    %154 = arith.addf %152, %153 : vector<8x128xf32>
    %155 = math.tanh %154 : vector<8x128xf32>
    %156 = arith.mulf %149, %155 : vector<8x128xf32>
    %c6_i32 = arith.constant 6 : i32
    %c8_i32_49 = arith.constant 8 : i32
    %157 = arith.muli %c6_i32, %c8_i32_49 : i32
    %158 = tpu.assume_multiple %157, 8 : i32
    %159 = arith.index_cast %158 : i32 to index
    %c0_50 = arith.constant 0 : index
    %160 = vector.load %arg9[%159, %c0_50] : memref<64x512xf32, #tpu.memory_space<vmem>>, vector<8x512xf32>
    %161 = arith.truncf %156 : vector<8x128xf32> to vector<8x128xbf16>
    %c0_51 = arith.constant 0 : index
    %c0_52 = arith.constant 0 : index
    %162 = vector.load %arg5[%c0_51, %c0_52] : memref<128x512xbf16, #tpu.memory_space<vmem>>, vector<128x512xbf16>
    %cst_53 = arith.constant dense<0.000000e+00> : vector<8x512xf32>
    %163 = tpu.matmul %161, %162, %cst_53 {dimension_numbers = #tpu.dot_dimension_numbers<[1], [0], [0], [1], [0, 0, 1, 1], [], []>} : vector<8x128xbf16>, vector<128x512xbf16>, vector<8x512xf32> -> vector<8x512xf32>
    %164 = arith.addf %160, %163 : vector<8x512xf32>
    %165 = vector.extract_strided_slice %164 {offsets = [0, 0], sizes = [8, 384], strides = [1, 1]} : vector<8x512xf32> to vector<8x384xf32>
    %166 = arith.negf %165 : vector<8x384xf32>
    %167 = math.exp %166 : vector<8x384xf32>
    %cst_54 = arith.constant 1.000000e+00 : f32
    %168 = vector.broadcast %cst_54 : f32 to vector<8x384xf32>
    %169 = arith.addf %168, %167 : vector<8x384xf32>
    %170 = arith.divf %168, %169 : vector<8x384xf32>
    %171 = vector.extract_strided_slice %170 {offsets = [0, 0], sizes = [8, 128], strides = [1, 1]} : vector<8x384xf32> to vector<8x128xf32>
    %172 = vector.extract_strided_slice %170 {offsets = [0, 128], sizes = [8, 128], strides = [1, 1]} : vector<8x384xf32> to vector<8x128xf32>
    %173 = vector.extract_strided_slice %170 {offsets = [0, 256], sizes = [8, 128], strides = [1, 1]} : vector<8x384xf32> to vector<8x128xf32>
    %174 = vector.extract_strided_slice %164 {offsets = [0, 384], sizes = [8, 128], strides = [1, 1]} : vector<8x512xf32> to vector<8x128xf32>
    %175 = math.tanh %174 : vector<8x128xf32>
    %176 = arith.mulf %172, %154 : vector<8x128xf32>
    %177 = arith.mulf %171, %175 : vector<8x128xf32>
    %178 = arith.addf %176, %177 : vector<8x128xf32>
    %179 = math.tanh %178 : vector<8x128xf32>
    %180 = arith.mulf %173, %179 : vector<8x128xf32>
    %c7_i32 = arith.constant 7 : i32
    %c8_i32_55 = arith.constant 8 : i32
    %181 = arith.muli %c7_i32, %c8_i32_55 : i32
    %182 = tpu.assume_multiple %181, 8 : i32
    %183 = arith.index_cast %182 : i32 to index
    %c0_56 = arith.constant 0 : index
    %184 = vector.load %arg9[%183, %c0_56] : memref<64x512xf32, #tpu.memory_space<vmem>>, vector<8x512xf32>
    %185 = arith.truncf %180 : vector<8x128xf32> to vector<8x128xbf16>
    %c0_57 = arith.constant 0 : index
    %c0_58 = arith.constant 0 : index
    %186 = vector.load %arg5[%c0_57, %c0_58] : memref<128x512xbf16, #tpu.memory_space<vmem>>, vector<128x512xbf16>
    %cst_59 = arith.constant dense<0.000000e+00> : vector<8x512xf32>
    %187 = tpu.matmul %185, %186, %cst_59 {dimension_numbers = #tpu.dot_dimension_numbers<[1], [0], [0], [1], [0, 0, 1, 1], [], []>} : vector<8x128xbf16>, vector<128x512xbf16>, vector<8x512xf32> -> vector<8x512xf32>
    %188 = arith.addf %184, %187 : vector<8x512xf32>
    %189 = vector.extract_strided_slice %188 {offsets = [0, 0], sizes = [8, 384], strides = [1, 1]} : vector<8x512xf32> to vector<8x384xf32>
    %190 = arith.negf %189 : vector<8x384xf32>
    %191 = math.exp %190 : vector<8x384xf32>
    %cst_60 = arith.constant 1.000000e+00 : f32
    %192 = vector.broadcast %cst_60 : f32 to vector<8x384xf32>
    %193 = arith.addf %192, %191 : vector<8x384xf32>
    %194 = arith.divf %192, %193 : vector<8x384xf32>
    %195 = vector.extract_strided_slice %194 {offsets = [0, 0], sizes = [8, 128], strides = [1, 1]} : vector<8x384xf32> to vector<8x128xf32>
    %196 = vector.extract_strided_slice %194 {offsets = [0, 128], sizes = [8, 128], strides = [1, 1]} : vector<8x384xf32> to vector<8x128xf32>
    %197 = vector.extract_strided_slice %194 {offsets = [0, 256], sizes = [8, 128], strides = [1, 1]} : vector<8x384xf32> to vector<8x128xf32>
    %198 = vector.extract_strided_slice %188 {offsets = [0, 384], sizes = [8, 128], strides = [1, 1]} : vector<8x512xf32> to vector<8x128xf32>
    %199 = math.tanh %198 : vector<8x128xf32>
    %200 = arith.mulf %196, %178 : vector<8x128xf32>
    %201 = arith.mulf %195, %199 : vector<8x128xf32>
    %202 = arith.addf %200, %201 : vector<8x128xf32>
    %203 = math.tanh %202 : vector<8x128xf32>
    %204 = arith.mulf %197, %203 : vector<8x128xf32>
    %c8_i32_61 = arith.constant 8 : i32
    %c0_62 = arith.constant 0 : index
    %c0_63 = arith.constant 0 : index
    %205 = vector.load %arg10[%c0_62, %c0_63] : memref<8x128xf32, #tpu.memory_space<vmem>>, vector<8x128xf32>
    tpu.vector_store %arg10[%c0_62, %c0_63], %204 {strides = array<i32>} : memref<8x128xf32, #tpu.memory_space<vmem>>, vector<8x128xf32>,
    %c0_64 = arith.constant 0 : index
    %c0_65 = arith.constant 0 : index
    %206 = vector.load %arg11[%c0_64, %c0_65] : memref<8x128xf32, #tpu.memory_space<vmem>>, vector<8x128xf32>
    tpu.vector_store %arg11[%c0_64, %c0_65], %202 {strides = array<i32>} : memref<8x128xf32, #tpu.memory_space<vmem>>, vector<8x128xf32>,
    %c0_i32_66 = arith.constant 0 : i32
    %207 = arith.cmpi eq, %arg1, %c0_i32_66 : i32
    %208 = arith.extui %207 : i1 to i32
    %c0_i32_67 = arith.constant 0 : i32
    %209 = arith.cmpi ne, %208, %c0_i32_67 : i32
    scf.if %209 {
      %c0_68 = arith.constant 0 : index
      %c0_69 = arith.constant 0 : index
      %210 = vector.load %arg6[%c0_68, %c0_69] : memref<1x128xf32, #tpu.memory_space<vmem>>, vector<1x128xf32>
      %211 = vector.broadcast %210 : vector<1x128xf32> to vector<8x128xf32>
      %212 = arith.mulf %204, %211 : vector<8x128xf32>
      %cst_70 = arith.constant dense<0.000000e+00> : vector<8xf32>
      %213 = vector.multi_reduction <add>, %212, %cst_70 [1] : vector<8x128xf32> to vector<8xf32>
      %214 = vector.shape_cast %213 : vector<8xf32> to vector<8x1xf32>
      %c0_71 = arith.constant 0 : index
      %c0_72 = arith.constant 0 : index
      %215 = memref.load %arg7[%c0_71, %c0_72] : memref<1x1xf32, #tpu.memory_space<smem>>
      %216 = vector.broadcast %215 : f32 to vector<8x1xf32>
      %217 = arith.addf %214, %216 : vector<8x1xf32>
      %218 = vector.shape_cast %217 : vector<8x1xf32> to vector<8x1xf32>
      %219 = vector.broadcast %218 : vector<8x1xf32> to vector<8x128xf32>
      %c0_73 = arith.constant 0 : index
      %c0_74 = arith.constant 0 : index
      %220 = vector.load %arg8[%c0_73, %c0_74] : memref<8x128xf32, #tpu.memory_space<vmem>>, vector<8x128xf32>
      tpu.vector_store %arg8[%c0_73, %c0_74], %219 {strides = array<i32>} : memref<8x128xf32, #tpu.memory_space<vmem>>, vector<8x128xf32>,
    } else {
    }
    return
  }
  func.func @transform_0(%arg0: i32, %arg1: i32) -> (i32, i32, i32) {
    %c0_i32 = arith.constant 0 : i32
    %c0_i32_0 = arith.constant 0 : i32
    return %arg1, %arg0, %c0_i32 : i32, i32, i32
  }
  func.func @transform_1(%arg0: i32, %arg1: i32) -> (i32, i32) {
    %c0_i32 = arith.constant 0 : i32
    %c0_i32_0 = arith.constant 0 : i32
    %c0_i32_1 = arith.constant 0 : i32
    return %c0_i32, %c0_i32_0 : i32, i32
  }
  func.func @transform_2(%arg0: i32, %arg1: i32) -> (i32, i32) {
    %c0_i32 = arith.constant 0 : i32
    %c0_i32_0 = arith.constant 0 : i32
    %c0_i32_1 = arith.constant 0 : i32
    return %c0_i32, %c0_i32_0 : i32, i32
  }
  func.func @transform_3(%arg0: i32, %arg1: i32) -> (i32, i32) {
    %c0_i32 = arith.constant 0 : i32
    %c0_i32_0 = arith.constant 0 : i32
    %c0_i32_1 = arith.constant 0 : i32
    return %c0_i32, %c0_i32_0 : i32, i32
  }
  func.func @transform_4(%arg0: i32, %arg1: i32) -> (i32, i32) {
    %c0_i32 = arith.constant 0 : i32
    %c0_i32_0 = arith.constant 0 : i32
    %c0_i32_1 = arith.constant 0 : i32
    return %c0_i32, %c0_i32_0 : i32, i32
  }
  func.func @transform_5(%arg0: i32, %arg1: i32) -> (i32, i32) {
    %c0_i32 = arith.constant 0 : i32
    %c0_i32_0 = arith.constant 0 : i32
    %c0_i32_1 = arith.constant 0 : i32
    return %c0_i32, %c0_i32_0 : i32, i32
  }
  func.func @transform_6(%arg0: i32, %arg1: i32) -> (i32, i32) {
    %c0_i32 = arith.constant 0 : i32
    %c0_i32_0 = arith.constant 0 : i32
    return %arg0, %c0_i32 : i32, i32
  }
}

</mosaic_0001>

<bundles_post_ra>
// kernel: tpu_custom_call.1
= control target key start
LH: loop header
LB: loop body
LE: loop exit
PB: predicated region body
PF: predicated region fallthrough
CT: control target
= control target key end

     0   :  { %12 = vsyncpa [#allocation7], 0  ;;  %s2547_s0 = inlined_call_operand.hbm [shape: bf16[8,8,16], index: 0, kind: input, shape index: {}]   ;;  %s2548_s1 = inlined_call_operand.hbm [shape: bf16[16,512], index: 1, kind: input, shape index: {}]   ;;  %s2549_s2 = inlined_call_operand.vmem [shape: f32[1,512], index: 2, kind: input, shape index: {}]   ;;  %s2550_s3 = inlined_call_operand.hbm [shape: bf16[128,512], index: 3, kind: input, shape index: {}]   ;;  %s2551_s4 = inlined_call_operand.vmem [shape: f32[1,128], index: 4, kind: input, shape index: {}]   ;;  %s2552_s5 = inlined_call_operand.<no memory space> [shape: f32[1,1], index: 5, kind: input, shape index: {}]   ;;  %s2553_s6 = inlined_call_operand.hbm [shape: f32[8,128], index: 6, kind: output, shape index: {}]  }
   0x1   :  { %13 = vsyncpa [#allocation10], 0 }
   0x2   :  { %14 = vsyncpa [#allocation8], 0  ;;  %s1913_s21 = smov [#allocation9]   ;;  %s1819_s25 = scalar_lea.hbm %s2548_s1, 512 }
   0x3   :  { %s32_s22 = sshll.u32 %s1913_s21, 4  ;;  %p1820_p0 = scmp.ne.s32.totalorder %s2548_s1, %s1819_s25  ;;  %s33_s22 = int_to_ptr.vmem [resolvable:$true] %s32_s22 }
   0x4   :  { %p1823_p1 = scmp.lt.u32.totalorder %s1819_s25, %s2548_s1 }
   0x6   :  { %p1825_p2 = pnand %p1823_p1, %p1820_p0 }
   0x8   :  { %1828 = shalt.err (!%p1825_p2)
}
   0x9   :  { %s1829_s30 = scalar_lea.vmem %s33_s22, 512  ;;  %p1834_p4 = scmp.lt.s32.totalorder %s33_s22, %s33_s22 }
   0xa   :  { %p1830_p3 = scmp.ne.s32.totalorder %s33_s22, %s1829_s30  ;;  %p1835_p5 = scmp.lt.s32.totalorder %s1829_s30, %s1829_s30 }
   0xc   :  { %p1836_p6 = por %p1835_p5, %p1834_p4 }
   0xe   :  { %p1837_p7 = pnand %p1836_p6, %p1830_p3 }
  0x10   :  { %1840 = shalt.err (!%p1837_p7)
}
  0x11   :  { %s1914_s7 = smov 256   ;;  %s1915_s8 = smov 16  }
  0x12   :  { %38 = dma.hbm_to_vmem [thread:$0]  %s2548_s1, 512, %s33_s22, [#allocation10], %s1914_s7, %s1914_s7, %s1915_s8  }
  0x13   :  { %s1916_s11 = smov [#allocation6]   ;;  %s1841_s15 = scalar_lea.hbm %s2547_s0, 512 }
  0x14   :  { %s20_s12 = sshll.u32 %s1916_s11, 4  ;;  %p1842_p8 = scmp.ne.s32.totalorder %s2547_s0, %s1841_s15  ;;  %s21_s12 = int_to_ptr.vmem [resolvable:$true] %s20_s12 }
  0x15   :  { %p1845_p9 = scmp.lt.u32.totalorder %s1841_s15, %s2547_s0 }
  0x17   :  { %p1847_p10 = pnand %p1845_p9, %p1842_p8 }
  0x19   :  { %1850 = shalt.err (!%p1847_p10)
}
  0x1a   :  { %s1851_s20 = scalar_lea.vmem %s21_s12, 512  ;;  %p1856_p12 = scmp.lt.s32.totalorder %s21_s12, %s21_s12 }
  0x1b   :  { %p1852_p11 = scmp.ne.s32.totalorder %s21_s12, %s1851_s20  ;;  %p1857_p13 = scmp.lt.s32.totalorder %s1851_s20, %s1851_s20 }
  0x1d   :  { %p1858_p0 = por %p1857_p13, %p1856_p12 }
  0x1f   :  { %p1859_p1 = pnand %p1858_p0, %p1852_p11 }
  0x21   :  { %1862 = shalt.err (!%p1859_p1)
}
  0x22   :  { %s1917_s1 = smov 64   ;;  %s1918_s21 = smov 4  }
  0x23   :  { %26 = dma.hbm_to_vmem [thread:$0]  %s2547_s0, 512, %s21_s12, [#allocation7], %s1917_s1, %s1917_s1, %s1918_s21  }
  0x24   :  { %s1919_s24 = smov [#allocation11]   ;;  %s1863_s28 = scalar_lea.hbm %s2550_s3, 4096 }
  0x25   :  { %s46_s25 = sshll.u32 %s1919_s24, 4  ;;  %p1864_p2 = scmp.ne.s32.totalorder %s2550_s3, %s1863_s28  ;;  %s47_s25 = int_to_ptr.vmem [resolvable:$true] %s46_s25 }
  0x26   :  { %p1867_p3 = scmp.lt.u32.totalorder %s1863_s28, %s2550_s3 }
  0x28   :  { %p1869_p4 = pnand %p1867_p3, %p1864_p2 }
  0x2a   :  { %1872 = shalt.err (!%p1869_p4)
}
  0x2b   :  { %s1873_s11 = scalar_lea.vmem %s47_s25, 4096  ;;  %p1878_p6 = scmp.lt.s32.totalorder %s47_s25, %s47_s25 }
  0x2c   :  { %p1874_p5 = scmp.ne.s32.totalorder %s47_s25, %s1873_s11  ;;  %p1879_p7 = scmp.lt.s32.totalorder %s1873_s11, %s1873_s11 }
  0x2e   :  { %p1880_p8 = por %p1879_p7, %p1878_p6 }
  0x30   :  { %p1881_p9 = pnand %p1880_p8, %p1874_p5 }
  0x32   :  { %1884 = shalt.err (!%p1881_p9)
}
  0x33   :  { %52 = dma.hbm_to_vmem [thread:$0]  %s2550_s3, 4096, %s47_s25, [#allocation10], %s1914_s7, %s1914_s7, %s1915_s8  }
  0x34   :  { %1907 = dma.done.wait [#allocation7], 512  }
  0x35   :  { %1908 = vsyncadd [#allocation7], 4294966784 }
  0x36   :  { %1909 = dma.done.wait [#allocation10], 4608  }
  0x37   :  { %1910 = vsyncadd [#allocation10], 4294962688  ;;  %v2554_v0 = vmov 0   ;;  %v1601_v1 = vld [vmem:[#allocation9 + $0x4] ss:$16 sps:$4 sm:$0xff]   ;;  %vm147_vm0 = vcmask 130048   ;;  %v87_v42 = vlaneseq }
  0x38   :  { %192 = vmatprep.mubr.bf16.mxu0 %v2554_v0  ;;  %265 = vmatprep.mubr.bf16.mxu1 %v2554_v0  ;;  %v1603_v2 = vld [vmem:[#allocation9 + $0xc] ss:$16 sps:$4 sm:$0xff]   ;;  %v1605_v3 = vld [vmem:[#allocation9] ss:$16 sps:$4 sm:$0xff]   ;;  %v1606_v4 = vld [vmem:[#allocation9 + $0x8] ss:$16 sps:$4 sm:$0xff]  }
  0x39   :  { %160 = vmatprep.subr.bf16.mxu0 %v1601_v1  ;;  %233 = vmatprep.subr.bf16.mxu1 %v1603_v2  ;;  %v1607_v5 = vld [vmem:[#allocation6] sm:$0xff]   ;;  %v2004_v7 = vld [vmem:[#allocation11 + $0xc] ss:$16 sps:$4 sm:$0xff]   ;;  %v2009_v9 = vld [vmem:[#allocation11 + $0x8] ss:$16 sps:$4 sm:$0xff]   ;;  %v1921_v41 = vmov 0.0|0.0  }
  0x3a   :  { %161 = vmatpush1.bf16.msra.mxu0 %v1605_v3  ;;  %234 = vmatpush1.bf16.msra.mxu1 %v1606_v4  ;;  %v2002_v6 = vld [vmem:[#allocation11 + $0x4] ss:$16 sps:$4 sm:$0xff]   ;;  %v2006_v8 = vld [vmem:[#allocation11] ss:$16 sps:$4 sm:$0xff]   ;;  %v2017_v11 = vld [vmem:[#allocation11 + $0x2c] ss:$16 sps:$4 sm:$0xff]  }
  0x3b   :  { %540 = vmatprep.subr.bf16.mxu0 %v2002_v6  ;;  %v2013_v10 = vld [vmem:[#allocation11 + $0x24] ss:$16 sps:$4 sm:$0xff]   ;;  %581 = vmatprep.subr.bf16.mxu1 %v2004_v7  ;;  %v2019_v12 = vld [vmem:[#allocation11 + $0x20] ss:$16 sps:$4 sm:$0xff]   ;;  %v2021_v13 = vld [vmem:[#allocation11 + $0x28] ss:$16 sps:$4 sm:$0xff]  }
  0x3c   :  { %v1620_v14 = vld [vmem:[#allocation6 + $0x8] sm:$0xff]   ;;  %v2027_v15 = vld [vmem:[#allocation11 + $0x44] ss:$16 sps:$4 sm:$0xff]   ;;  %v2033_v17 = vld [vmem:[#allocation11 + $0x40] ss:$16 sps:$4 sm:$0xff]   ;;  %v88_v43 = vshrl.u32 %v87_v42, 7 }
  0x3d   :  { %1526 = vmatmul.mubr.msk.bf16.vlgmr.msra.gmra.mrb[0].mxu0 %vm147_vm0, %v1607_v5  ;;  %1530 = vmatmul.mubr.msk.bf16.vlgmr.msra.gmra.mrb[0].mxu1 %vm147_vm0, %v1607_v5  ;;  %v2030_v16 = vld [vmem:[#allocation11 + $0x4c] ss:$16 sps:$4 sm:$0xff]   ;;  %v2035_v18 = vld [vmem:[#allocation11 + $0x48] ss:$16 sps:$4 sm:$0xff]   ;;  %v2039_v19 = vld [vmem:[#allocation11 + $0x64] ss:$16 sps:$4 sm:$0xff]  }
  0x3e   :  { %541 = vmatpush1.bf16.msra.mxu0 %v2006_v8  ;;  %582 = vmatpush1.bf16.msra.mxu1 %v2009_v9  ;;  %v2042_v20 = vld [vmem:[#allocation11 + $0x6c] ss:$16 sps:$4 sm:$0xff]   ;;  %v2046_v21 = vld [vmem:[#allocation11 + $0x60] ss:$16 sps:$4 sm:$0xff]   ;;  %v2049_v22 = vld [vmem:[#allocation11 + $0x68] ss:$16 sps:$4 sm:$0xff]  }
  0x3f   :  { %542 = vmatprep.subr.bf16.mxu0 %v2013_v10  ;;  %583 = vmatprep.subr.bf16.mxu1 %v2017_v11  ;;  %v2054_v23 = vld [vmem:[#allocation11 + $0x84] ss:$16 sps:$4 sm:$0xff]   ;;  %v2058_v24 = vld [vmem:[#allocation11 + $0x8c] ss:$16 sps:$4 sm:$0xff]   ;;  %v2061_v26 = vld [vmem:[#allocation11 + $0x80] ss:$16 sps:$4 sm:$0xff]  }
  0x40   :  { %202 = vmatprep.mubr.bf16.mxu0 %v2554_v0  ;;  %275 = vmatprep.mubr.bf16.mxu1 %v2554_v0  ;;  %v1633_v25 = vld [vmem:[#allocation6 + $0x10] sm:$0xff]   ;;  %v2065_v27 = vld [vmem:[#allocation11 + $0x88] ss:$16 sps:$4 sm:$0xff]   ;;  %v2070_v29 = vld [vmem:[#allocation11 + $0xac] ss:$16 sps:$4 sm:$0xff]   ;;  %v97_v44 = vsub.s32 2, %v88_v43 }
  0x41   :  { %v2067_v28 = vld [vmem:[#allocation11 + $0xa4] ss:$16 sps:$4 sm:$0xff]   ;;  %v2075_v30 = vld [vmem:[#allocation11 + $0xa0] ss:$16 sps:$4 sm:$0xff]   ;;  %v2077_v31 = vld [vmem:[#allocation11 + $0xa8] ss:$16 sps:$4 sm:$0xff]  }
  0x42   :  { %543 = vmatpush1.bf16.msra.mxu0 %v2019_v12  ;;  %584 = vmatpush1.bf16.msra.mxu1 %v2021_v13  ;;  %v2082_v32 = vld [vmem:[#allocation11 + $0xc4] ss:$16 sps:$4 sm:$0xff]   ;;  %v2086_v33 = vld [vmem:[#allocation11 + $0xcc] ss:$16 sps:$4 sm:$0xff]   ;;  %v2089_v35 = vld [vmem:[#allocation11 + $0xc0] ss:$16 sps:$4 sm:$0xff]  }
  0x43   :  { %544 = vmatprep.subr.bf16.mxu0 %v2027_v15  ;;  %585 = vmatprep.subr.bf16.mxu1 %v2030_v16  ;;  %v1646_v34 = vld [vmem:[#allocation6 + $0x18] sm:$0xff]   ;;  %v2095_v37 = vld [vmem:[#allocation11 + $0xe4] ss:$16 sps:$4 sm:$0xff]   ;;  %v2103_v39 = vld [vmem:[#allocation11 + $0xe0] ss:$16 sps:$4 sm:$0xff]   ;;  %v101_v45 = vsub.s32 3, %v88_v43 }
  0x44   :  { %v2093_v36 = vld [vmem:[#allocation11 + $0xc8] ss:$16 sps:$4 sm:$0xff]   ;;  %v2098_v38 = vld [vmem:[#allocation11 + $0xec] ss:$16 sps:$4 sm:$0xff]   ;;  %v89_v46 = vsub.s32 0, %v88_v43  ;;  %v93_v48 = vsub.s32 1, %v88_v43 }
  0x45   :  { %1527 = vmatmul.mubr.msk.bf16.gmra.mrb[4].mxu0 %vm147_vm0, %v1620_v14  ;;  %1531 = vmatmul.mubr.msk.bf16.gmra.mrb[4].mxu1 %vm147_vm0, %v1620_v14  ;;  %v2108_v40 = vld [vmem:[#allocation11 + $0xe8] ss:$16 sps:$4 sm:$0xff]   ;;  %v85_v47 = vld [vmem:[%s2549_s2] sm:$0xf]  ;;  %s1922_s15 = smov [#allocation12]  }
  0x46   :  { %545 = vmatpush1.bf16.msra.mxu0 %v2033_v17  ;;  %212 = vmatprep.mubr.bf16.mxu0 %v2554_v0  ;;  %v2153_v49 = vrot.slane %v85_v47, %v97_v44  ;;  %v2159_v52 = vrot.slane %v85_v47, %v101_v45  ;;  %v90_v53 = vrot.slane %v85_v47, %v89_v46  ;;  %s1501_s16 = sshll.u32 %s1922_s15, 4  ;;  %s1502_s16 = int_to_ptr.vmem [resolvable:$true] %s1501_s16 }
  0x47   :  { %586 = vmatpush1.bf16.msra.mxu1 %v2035_v18  ;;  %546 = vmatprep.subr.bf16.mxu0 %v2039_v19  ;;  %v94_v56 = vrot.slane %v85_v47, %v93_v48  ;;  %s1885_s17 = scalar_lea.vmem %s1502_s16, 128  ;;  %p1890_p11 = scmp.lt.s32.totalorder %s1502_s16, %s1502_s16 }
  0x48   :  { %587 = vmatprep.subr.bf16.mxu1 %v2042_v20  ;;  %285 = vmatprep.mubr.bf16.mxu1 %v2554_v0  ;;  %p1886_p10 = scmp.ne.s32.totalorder %s1502_s16, %s1885_s17  ;;  %p1891_p12 = scmp.lt.s32.totalorder %s1885_s17, %s1885_s17 }
  0x4a   :  { %547 = vmatpush1.bf16.msra.mxu0 %v2046_v21  ;;  %p1892_p13 = por %p1891_p12, %p1890_p11 }
  0x4b   :  { %588 = vmatpush1.bf16.msra.mxu1 %v2049_v22  ;;  %548 = vmatprep.subr.bf16.mxu0 %v2054_v23 }
  0x4c   :  { %589 = vmatprep.subr.bf16.mxu1 %v2058_v24  ;;  %p1893_p0 = pnand %p1892_p13, %p1886_p10 }
  0x4d   :  { %1528 = vmatmul.mubr.msk.bf16.gmra.mrb[8].mxu0 %vm147_vm0, %v1633_v25  ;;  %1532 = vmatmul.mubr.msk.bf16.gmra.mrb[8].mxu1 %vm147_vm0, %v1633_v25 }
  0x4e   :  { %549 = vmatpush1.bf16.msra.mxu0 %v2061_v26  ;;  %222 = vmatprep.mubr.bf16.mxu0 %v2554_v0 }
  0x4f   :  { %590 = vmatpush1.bf16.msra.mxu1 %v2065_v27  ;;  %550 = vmatprep.subr.bf16.mxu0 %v2067_v28 }
  0x50   :  { %591 = vmatprep.subr.bf16.mxu1 %v2070_v29  ;;  %295 = vmatprep.mubr.bf16.mxu1 %v2554_v0 }
  0x52   :  { %551 = vmatpush1.bf16.msra.mxu0 %v2075_v30 }
  0x53   :  { %592 = vmatpush1.bf16.msra.mxu1 %v2077_v31  ;;  %552 = vmatprep.subr.bf16.mxu0 %v2082_v32 }
  0x54   :  { %593 = vmatprep.subr.bf16.mxu1 %v2086_v33 }
  0x55   :  { %1529 = vmatmul.mubr.msk.bf16.gmra.mrb[12].mxu0 %vm147_vm0, %v1646_v34  ;;  %1533 = vmatmul.mubr.msk.bf16.gmra.mrb[12].mxu1 %vm147_vm0, %v1646_v34 }
  0x56   :  { %553 = vmatpush1.bf16.msra.mxu0 %v2089_v35  ;;  %572 = vmatprep.mubr.bf16.mxu0 %v2554_v0 }
  0x57   :  { %594 = vmatpush1.bf16.msra.mxu1 %v2093_v36  ;;  %554 = vmatprep.subr.bf16.mxu0 %v2095_v37 }
  0x58   :  { %595 = vmatprep.subr.bf16.mxu1 %v2098_v38  ;;  %613 = vmatprep.mubr.bf16.mxu1 %v2554_v0 }
  0x5a   :  { %555 = vmatpush1.bf16.msra.mxu0 %v2103_v39 }
  0x5b   :  { %596 = vmatpush1.bf16.msra.mxu1 %v2108_v40  ;;  %658 = vmatprep.subr.bf16.mxu0 %v2002_v6 }
  0x5c   :  { %699 = vmatprep.subr.bf16.mxu1 %v2004_v7 }
  0x5d   :  { %573 = vmatmul.mubr.bf16.vlgmr.msra.gmra.mrb[16].mxu0 %v1921_v41 }
  0x5e   :  { %614 = vmatmul.mubr.bf16.vlgmr.msra.gmra.mrb[16].mxu1 %v1921_v41  ;;  %659 = vmatpush1.bf16.msra.mxu0 %v2006_v8 }
  0x5f   :  { %700 = vmatpush1.bf16.msra.mxu1 %v2009_v9  ;;  %660 = vmatprep.subr.bf16.mxu0 %v2013_v10 }
  0x60   :  { %701 = vmatprep.subr.bf16.mxu1 %v2017_v11  ;;  %690 = vmatprep.mubr.bf16.mxu0 %v2554_v0 }
  0x61   :  { %731 = vmatprep.mubr.bf16.mxu1 %v2554_v0 }
  0x62   :  { %661 = vmatpush1.bf16.msra.mxu0 %v2019_v12 }
  0x63   :  { %702 = vmatpush1.bf16.msra.mxu1 %v2021_v13  ;;  %662 = vmatprep.subr.bf16.mxu0 %v2027_v15 }
  0x64   :  { %703 = vmatprep.subr.bf16.mxu1 %v2030_v16 }
  0x66   :  { %663 = vmatpush1.bf16.msra.mxu0 %v2033_v17 }
  0x67   :  { %704 = vmatpush1.bf16.msra.mxu1 %v2035_v18  ;;  %664 = vmatprep.subr.bf16.mxu0 %v2039_v19 }
  0x68   :  { %705 = vmatprep.subr.bf16.mxu1 %v2042_v20 }
  0x6a   :  { %665 = vmatpush1.bf16.msra.mxu0 %v2046_v21 }
  0x6b   :  { %706 = vmatpush1.bf16.msra.mxu1 %v2049_v22  ;;  %666 = vmatprep.subr.bf16.mxu0 %v2054_v23 }
  0x6c   :  { %707 = vmatprep.subr.bf16.mxu1 %v2058_v24 }
  0x6e   :  { %667 = vmatpush1.bf16.msra.mxu0 %v2061_v26 }
  0x6f   :  { %708 = vmatpush1.bf16.msra.mxu1 %v2065_v27  ;;  %668 = vmatprep.subr.bf16.mxu0 %v2067_v28 }
  0x70   :  { %709 = vmatprep.subr.bf16.mxu1 %v2070_v29 }
  0x72   :  { %669 = vmatpush1.bf16.msra.mxu0 %v2075_v30 }
  0x73   :  { %710 = vmatpush1.bf16.msra.mxu1 %v2077_v31  ;;  %670 = vmatprep.subr.bf16.mxu0 %v2082_v32 }
  0x74   :  { %711 = vmatprep.subr.bf16.mxu1 %v2086_v33 }
  0x76   :  { %671 = vmatpush1.bf16.msra.mxu0 %v2089_v35 }
  0x77   :  { %712 = vmatpush1.bf16.msra.mxu1 %v2093_v36  ;;  %672 = vmatprep.subr.bf16.mxu0 %v2095_v37 }
  0x78   :  { %713 = vmatprep.subr.bf16.mxu1 %v2098_v38 }
  0x7a   :  { %673 = vmatpush1.bf16.msra.mxu0 %v2103_v39 }
  0x7b   :  { %714 = vmatpush1.bf16.msra.mxu1 %v2108_v40  ;;  %776 = vmatprep.subr.bf16.mxu0 %v2002_v6 }
  0x7c   :  { %817 = vmatprep.subr.bf16.mxu1 %v2004_v7 }
 0x110   :  { %v2155_v50 = vpop.f32.mrb[0].mxu0  ;;  %v2157_v51 = vpop.f32.mrb[0].mxu1 }
 0x111   :  { %v196_v54 = vpop.f32.mrb[1].mxu0  ;;  %v269_v55 = vpop.f32.mrb[1].mxu1 }
 0x112   :  { %v198_v57 = vpop.f32.mrb[2].mxu0  ;;  %v271_v58 = vpop.f32.mrb[2].mxu1 }
 0x113   :  { %v2161_v59 = vadd.f32 %v198_v57, %v90_v53  ;;  %v200_v60 = vpop.f32.mrb[3].mxu0  ;;  %v2164_v61 = vadd.f32 %v271_v58, %v2153_v49  ;;  %v273_v62 = vpop.f32.mrb[3].mxu1 }
 0x114   :  { %v2166_v63 = vadd.f32 %v200_v60, %v94_v56  ;;  %v2169_v1 = vadd.f32 %v273_v62, %v2159_v52 }
 0x118   :  { %v204_v2 = vpop.f32.mrb[4].mxu0  ;;  %v277_v3 = vpop.f32.mrb[4].mxu1 }
 0x119   :  { %v2171_v4 = vadd.f32 %v204_v2, %v90_v53  ;;  %v206_v5 = vpop.f32.mrb[5].mxu0  ;;  %v2174_v14 = vadd.f32 %v277_v3, %v2153_v49  ;;  %v279_v25 = vpop.f32.mrb[5].mxu1 }
 0x11a   :  { %v2176_v34 = vadd.f32 %v206_v5, %v94_v56  ;;  %v208_v41 = vpop.f32.mrb[6].mxu0  ;;  %v2179_v42 = vadd.f32 %v279_v25, %v2159_v52  ;;  %v281_v43 = vpop.f32.mrb[6].mxu1 }
 0x11b   :  { %v2181_v44 = vadd.f32 %v208_v41, %v90_v53  ;;  %v210_v45 = vpop.f32.mrb[7].mxu0  ;;  %v2184_v46 = vadd.f32 %v281_v43, %v2153_v49  ;;  %v283_v47 = vpop.f32.mrb[7].mxu1 }
 0x11c   :  { %2556 = vst [vmem:[#allocation16_spill] sm:$0xff] %v2179_v42  ;;  %v2186_v48 = vadd.f32 %v210_v45, %v94_v56  ;;  %v2189_v57 = vadd.f32 %v283_v47, %v2159_v52 }
 0x11d   :  { %2557 = vst [vmem:[#allocation17_spill] sm:$0xff] %v2181_v44  ;;  %2558 = vst [vmem:[#allocation18_spill] sm:$0xff] %v2184_v46 }
 0x11e   :  { %2559 = vst [vmem:[#allocation19_spill] sm:$0xff] %v2186_v48  ;;  %2560 = vst [vmem:[#allocation20_spill] sm:$0xff] %v2189_v57 }
 0x120   :  { %v214_v58 = vpop.f32.mrb[8].mxu0  ;;  %v287_v60 = vpop.f32.mrb[8].mxu1 }
 0x121   :  { %v2191_v62 = vadd.f32 %v214_v58, %v90_v53  ;;  %v216_v2 = vpop.f32.mrb[9].mxu0  ;;  %v2194_v3 = vadd.f32 %v287_v60, %v2153_v49  ;;  %v289_v5 = vpop.f32.mrb[9].mxu1 }
 0x122   :  { %v2196_v25 = vadd.f32 %v216_v2, %v94_v56  ;;  %v218_v41 = vpop.f32.mrb[10].mxu0  ;;  %v2199_v43 = vadd.f32 %v289_v5, %v2159_v52  ;;  %v291_v45 = vpop.f32.mrb[10].mxu1 }
 0x123   :  { %2561 = vst [vmem:[#allocation21_spill] sm:$0xff] %v2191_v62  ;;  %2562 = vst [vmem:[#allocation22_spill] sm:$0xff] %v2194_v3  ;;  %v2201_v0 = vadd.f32 %v218_v41, %v90_v53  ;;  %v220_v47 = vpop.f32.mrb[11].mxu0  ;;  %v2204_v57 = vadd.f32 %v291_v45, %v2153_v49  ;;  %v293_v58 = vpop.f32.mrb[11].mxu1 }
 0x124   :  { %2563 = vst [vmem:[#allocation23_spill] sm:$0xff] %v2196_v25  ;;  %2564 = vst [vmem:[#allocation24_spill] sm:$0xff] %v2199_v43  ;;  %v2206_v62 = vadd.f32 %v220_v47, %v94_v56  ;;  %v2209_v60 = vadd.f32 %v293_v58, %v2159_v52 }
 0x125   :  { %2565 = vst [vmem:[#allocation25_spill] sm:$0xff] %v2201_v0  ;;  %2566 = vst [vmem:[#allocation26_spill] sm:$0xff] %v2204_v57 }
 0x126   :  { %2567 = vst [vmem:[#allocation27_spill] sm:$0xff] %v2206_v62  ;;  %2568 = vst [vmem:[#allocation28_spill] sm:$0xff] %v2209_v60 }
 0x128   :  { %v224_v3 = vpop.f32.mrb[12].mxu0  ;;  %v297_v2 = vpop.f32.mrb[12].mxu1 }
 0x129   :  { %v2211_v25 = vadd.f32 %v224_v3, %v90_v53  ;;  %v226_v48 = vpop.f32.mrb[13].mxu0  ;;  %v2214_v5 = vadd.f32 %v297_v2, %v2153_v49  ;;  %v299_v41 = vpop.f32.mrb[13].mxu1 }
 0x12a   :  { %v2216_v0 = vadd.f32 %v226_v48, %v94_v56  ;;  %v228_v43 = vpop.f32.mrb[14].mxu0  ;;  %v2219_v45 = vadd.f32 %v299_v41, %v2159_v52  ;;  %v301_v47 = vpop.f32.mrb[14].mxu1  ;;  %v195_v48 = vadd.f32 %v2155_v50, %v90_v53  ;;  %v268_v41 = vadd.f32 %v2157_v51, %v2153_v49 }
 0x12b   :  { %2569 = vst [vmem:[#allocation29_spill] sm:$0xff] %v2211_v25  ;;  %2570 = vst [vmem:[#allocation30_spill] sm:$0xff] %v2214_v5  ;;  %v2221_v62 = vadd.f32 %v228_v43, %v90_v53  ;;  %v230_v58 = vpop.f32.mrb[15].mxu0  ;;  %v2224_v60 = vadd.f32 %v301_v47, %v2153_v49  ;;  %v303_v3 = vpop.f32.mrb[15].mxu1  ;;  %v270_v43 = vadd.f32 %v269_v55, %v2159_v52 }
 0x12c   :  { %2571 = vst [vmem:[#allocation31_spill] sm:$0xff] %v2216_v0  ;;  %2572 = vst [vmem:[#allocation32_spill] sm:$0xff] %v2219_v45  ;;  %v2226_v25 = vadd.f32 %v230_v58, %v94_v56  ;;  %v2229_v2 = vadd.f32 %v303_v3, %v2159_v52  ;;  %v197_v0 = vadd.f32 %v196_v54, %v94_v56 }
 0x12d   :  { %2573 = vst [vmem:[#allocation33_spill] sm:$0xff] %v2221_v62  ;;  %2574 = vst [vmem:[#allocation34_spill] sm:$0xff] %v2224_v60 }
 0x12e   :  { %2575 = vst [vmem:[#allocation35_spill] sm:$0xff] %v2226_v25  ;;  %2576 = vst [vmem:[#allocation36_spill] sm:$0xff] %v2229_v2 }
 0x130   :  { %v574_v45 = vpop.f32.mrb[16].mxu0 }
 0x131   :  { %v622_v62 = vadd.f32 %v574_v45, %v195_v48  ;;  %v615_v5 = vpop.f32.mrb[16].mxu1  ;;  %v576_v57 = vpop.f32.mrb[17].mxu0 }
 0x132   :  { %v624_v47 = vadd.f32 %v615_v5, %v268_v41  ;;  %v623_v60 = vadd.f32 %v576_v57, %v197_v0  ;;  %v617_v46 = vpop.f32.mrb[17].mxu1  ;;  %v578_v58 = vpop.f32.mrb[18].mxu0 }
 0x133   :  { %v1566_v25 = vmul.f32 -1.442695, %v622_v62  ;;  %v625_v44 = vadd.f32 %v617_v46, %v270_v43  ;;  %v579_v3 = vpop.f32.mrb[19].mxu0  ;;  %v619_v2 = vpop.f32.mrb[18].mxu1 }
 0x134   :  { %v1567_v42 = vmul.f32 -1.442695, %v623_v60  ;;  %v620_v50 = vpop.f32.mrb[19].mxu1  ;;  %v1568_v53 = vmul.f32 -1.442695, %v624_v47 }
 0x135   :  { %1659 = vpow2.f32 %v1566_v25 }
 0x136   :  { %1661 = vpow2.f32 %v1567_v42 }
 0x137   :  { %1663 = vpow2.f32 %v1568_v53 }
 0x138   :  { %1665 = vtanh.f32 %v625_v44  ;;  %v2577_v44 = vmov 0  }
 0x13f   :  { %v1660_v49 = vpop.eup %1659 }
 0x140   :  { %v635_v51 = vadd.f32 1.0, %v1660_v49  ;;  %v1662_v52 = vpop.eup %1661 }
 0x141   :  { %v636_v54 = vadd.f32 1.0, %v1662_v52  ;;  %v1664_v0 = vpop.eup %1663 }
 0x142   :  { %1667 = vrcp.f32 %v635_v51  ;;  %v1666_v55 = vpop.eup %1665  ;;  %v637_v62 = vadd.f32 1.0, %v1664_v0 }
 0x143   :  { %1669 = vrcp.f32 %v636_v54 }
 0x144   :  { %1671 = vrcp.f32 %v637_v62 }
 0x14c   :  { %v1668_v56 = vpop.eup %1667 }
 0x14d   :  { %v646_v57 = vmul.f32 %v1668_v56, %v1666_v55  ;;  %v1670_v46 = vpop.eup %1669 }
 0x14e   :  { %v645_v5 = vmul.f32 0.0, %v1670_v46  ;;  %v1672_v42 = vpop.eup %1671 }
 0x150   :  { %v2235_v60 = vadd.f32 %v646_v57, %v645_v5 }
 0x152   :  { %1673 = vtanh.f32 %v2235_v60 }
 0x15c   :  { %v1674_v25 = vpop.eup %1673 }
 0x15d   :  { %v649_v45 = vmul.f32 %v1674_v25, %v1672_v42 }
 0x15f   :  { %v657_v2 = vpack.c.bf16 %v649_v45, %v649_v45 }
 0x161   :  { %691 = vmatmul.mubr.bf16.vlgmr.msra.gmra.mrb[20].mxu0 %v657_v2  ;;  %732 = vmatmul.mubr.bf16.vlgmr.msra.gmra.mrb[20].mxu1 %v657_v2 }
 0x162   :  { %777 = vmatpush1.bf16.msra.mxu0 %v2006_v8  ;;  %818 = vmatpush1.bf16.msra.mxu1 %v2009_v9 }
 0x163   :  { %778 = vmatprep.subr.bf16.mxu0 %v2013_v10  ;;  %819 = vmatprep.subr.bf16.mxu1 %v2017_v11 }
 0x164   :  { %808 = vmatprep.mubr.bf16.mxu0 %v2577_v44  ;;  %849 = vmatprep.mubr.bf16.mxu1 %v2577_v44 }
 0x166   :  { %779 = vmatpush1.bf16.msra.mxu0 %v2019_v12  ;;  %820 = vmatpush1.bf16.msra.mxu1 %v2021_v13 }
 0x167   :  { %780 = vmatprep.subr.bf16.mxu0 %v2027_v15  ;;  %821 = vmatprep.subr.bf16.mxu1 %v2030_v16 }
 0x16a   :  { %781 = vmatpush1.bf16.msra.mxu0 %v2033_v17  ;;  %822 = vmatpush1.bf16.msra.mxu1 %v2035_v18 }
 0x16b   :  { %782 = vmatprep.subr.bf16.mxu0 %v2039_v19  ;;  %823 = vmatprep.subr.bf16.mxu1 %v2042_v20 }
 0x16e   :  { %783 = vmatpush1.bf16.msra.mxu0 %v2046_v21  ;;  %824 = vmatpush1.bf16.msra.mxu1 %v2049_v22 }
 0x16f   :  { %784 = vmatprep.subr.bf16.mxu0 %v2054_v23  ;;  %825 = vmatprep.subr.bf16.mxu1 %v2058_v24 }
 0x172   :  { %785 = vmatpush1.bf16.msra.mxu0 %v2061_v26  ;;  %826 = vmatpush1.bf16.msra.mxu1 %v2065_v27 }
 0x173   :  { %786 = vmatprep.subr.bf16.mxu0 %v2067_v28  ;;  %827 = vmatprep.subr.bf16.mxu1 %v2070_v29 }
 0x176   :  { %787 = vmatpush1.bf16.msra.mxu0 %v2075_v30  ;;  %828 = vmatpush1.bf16.msra.mxu1 %v2077_v31 }
 0x177   :  { %788 = vmatprep.subr.bf16.mxu0 %v2082_v32  ;;  %829 = vmatprep.subr.bf16.mxu1 %v2086_v33 }
 0x17a   :  { %789 = vmatpush1.bf16.msra.mxu0 %v2089_v35  ;;  %830 = vmatpush1.bf16.msra.mxu1 %v2093_v36 }
 0x17b   :  { %790 = vmatprep.subr.bf16.mxu0 %v2095_v37  ;;  %831 = vmatprep.subr.bf16.mxu1 %v2098_v38 }
 0x17e   :  { %791 = vmatpush1.bf16.msra.mxu0 %v2103_v39  ;;  %832 = vmatpush1.bf16.msra.mxu1 %v2108_v40 }
 0x17f   :  { %894 = vmatprep.subr.bf16.mxu0 %v2002_v6  ;;  %935 = vmatprep.subr.bf16.mxu1 %v2004_v7 }
 0x234   :  { %v692_v48 = vpop.f32.mrb[20].mxu0  ;;  %v733_v41 = vpop.f32.mrb[20].mxu1 }
 0x235   :  { %v740_v43 = vadd.f32 %v692_v48, %v2161_v59  ;;  %v742_v47 = vadd.f32 %v733_v41, %v2164_v61  ;;  %v694_v58 = vpop.f32.mrb[21].mxu0  ;;  %v735_v3 = vpop.f32.mrb[21].mxu1 }
 0x236   :  { %v741_v50 = vadd.f32 %v694_v58, %v2166_v63  ;;  %v743_v53 = vadd.f32 %v735_v3, %v2169_v1  ;;  %v696_v49 = vpop.f32.mrb[22].mxu0  ;;  %v737_v51 = vpop.f32.mrb[22].mxu1 }
 0x237   :  { %v1569_v52 = vmul.f32 -1.442695, %v740_v43  ;;  %v697_v54 = vpop.f32.mrb[23].mxu0  ;;  %v738_v0 = vpop.f32.mrb[23].mxu1  ;;  %v1571_v56 = vmul.f32 -1.442695, %v742_v47 }
 0x238   :  { %v1570_v55 = vmul.f32 -1.442695, %v741_v50 }
 0x239   :  { %1675 = vpow2.f32 %v1569_v52  ;;  %v2578_v52 = vld [vmem:[#allocation16_spill] sm:$0xff] }
 0x23a   :  { %1677 = vpow2.f32 %v1570_v55 }
 0x23b   :  { %1679 = vtanh.f32 %v743_v53 }
 0x23c   :  { %1681 = vpow2.f32 %v1571_v56 }
 0x243   :  { %v1676_v57 = vpop.eup %1675 }
 0x244   :  { %v753_v46 = vadd.f32 1.0, %v1676_v57  ;;  %v1678_v59 = vpop.eup %1677 }
 0x245   :  { %v754_v61 = vadd.f32 1.0, %v1678_v59  ;;  %v1680_v63 = vpop.eup %1679 }
 0x246   :  { %1683 = vrcp.f32 %v753_v46  ;;  %v1682_v62 = vpop.eup %1681 }
 0x247   :  { %1685 = vrcp.f32 %v754_v61  ;;  %v755_v25 = vadd.f32 1.0, %v1682_v62 }
 0x249   :  { %1687 = vrcp.f32 %v755_v25 }
 0x250   :  { %v1684_v1 = vpop.eup %1683 }
 0x251   :  { %v764_v5 = vmul.f32 %v1684_v1, %v1680_v63  ;;  %v1686_v42 = vpop.eup %1685 }
 0x252   :  { %v763_v45 = vmul.f32 %v1686_v42, %v2235_v60 }
 0x253   :  { %v1688_v48 = vpop.eup %1687 }
 0x254   :  { %v2277_v2 = vadd.f32 %v764_v5, %v763_v45 }
 0x256   :  { %1689 = vtanh.f32 %v2277_v2 }
 0x260   :  { %v1690_v41 = vpop.eup %1689 }
 0x261   :  { %v767_v43 = vmul.f32 %v1690_v41, %v1688_v48 }
 0x263   :  { %v775_v47 = vpack.c.bf16 %v767_v43, %v767_v43 }
 0x265   :  { %809 = vmatmul.mubr.bf16.vlgmr.msra.gmra.mrb[24].mxu0 %v775_v47  ;;  %850 = vmatmul.mubr.bf16.vlgmr.msra.gmra.mrb[24].mxu1 %v775_v47 }
 0x266   :  { %895 = vmatpush1.bf16.msra.mxu0 %v2006_v8  ;;  %936 = vmatpush1.bf16.msra.mxu1 %v2009_v9 }
 0x267   :  { %896 = vmatprep.subr.bf16.mxu0 %v2013_v10  ;;  %937 = vmatprep.subr.bf16.mxu1 %v2017_v11 }
 0x268   :  { %926 = vmatprep.mubr.bf16.mxu0 %v2577_v44  ;;  %967 = vmatprep.mubr.bf16.mxu1 %v2577_v44 }
 0x26a   :  { %897 = vmatpush1.bf16.msra.mxu0 %v2019_v12  ;;  %938 = vmatpush1.bf16.msra.mxu1 %v2021_v13 }
 0x26b   :  { %898 = vmatprep.subr.bf16.mxu0 %v2027_v15  ;;  %939 = vmatprep.subr.bf16.mxu1 %v2030_v16 }
 0x26e   :  { %899 = vmatpush1.bf16.msra.mxu0 %v2033_v17  ;;  %940 = vmatpush1.bf16.msra.mxu1 %v2035_v18 }
 0x26f   :  { %900 = vmatprep.subr.bf16.mxu0 %v2039_v19  ;;  %941 = vmatprep.subr.bf16.mxu1 %v2042_v20 }
 0x272   :  { %901 = vmatpush1.bf16.msra.mxu0 %v2046_v21  ;;  %942 = vmatpush1.bf16.msra.mxu1 %v2049_v22 }
 0x273   :  { %902 = vmatprep.subr.bf16.mxu0 %v2054_v23  ;;  %943 = vmatprep.subr.bf16.mxu1 %v2058_v24 }
 0x276   :  { %903 = vmatpush1.bf16.msra.mxu0 %v2061_v26  ;;  %944 = vmatpush1.bf16.msra.mxu1 %v2065_v27 }
 0x277   :  { %904 = vmatprep.subr.bf16.mxu0 %v2067_v28  ;;  %945 = vmatprep.subr.bf16.mxu1 %v2070_v29 }
 0x27a   :  { %905 = vmatpush1.bf16.msra.mxu0 %v2075_v30  ;;  %946 = vmatpush1.bf16.msra.mxu1 %v2077_v31 }
 0x27b   :  { %906 = vmatprep.subr.bf16.mxu0 %v2082_v32  ;;  %947 = vmatprep.subr.bf16.mxu1 %v2086_v33 }
 0x27e   :  { %907 = vmatpush1.bf16.msra.mxu0 %v2089_v35  ;;  %948 = vmatpush1.bf16.msra.mxu1 %v2093_v36 }
 0x27f   :  { %908 = vmatprep.subr.bf16.mxu0 %v2095_v37  ;;  %949 = vmatprep.subr.bf16.mxu1 %v2098_v38 }
 0x282   :  { %909 = vmatpush1.bf16.msra.mxu0 %v2103_v39  ;;  %950 = vmatpush1.bf16.msra.mxu1 %v2108_v40 }
 0x283   :  { %1012 = vmatprep.subr.bf16.mxu0 %v2002_v6  ;;  %1053 = vmatprep.subr.bf16.mxu1 %v2004_v7 }
 0x338   :  { %v810_v60 = vpop.f32.mrb[24].mxu0  ;;  %v851_v58 = vpop.f32.mrb[24].mxu1 }
 0x339   :  { %v858_v3 = vadd.f32 %v810_v60, %v2171_v4  ;;  %v860_v50 = vadd.f32 %v851_v58, %v2174_v14  ;;  %v812_v53 = vpop.f32.mrb[25].mxu0  ;;  %v853_v49 = vpop.f32.mrb[25].mxu1 }
 0x33a   :  { %v859_v51 = vadd.f32 %v812_v53, %v2176_v34  ;;  %v861_v54 = vadd.f32 %v853_v49, %v2578_v52  ;;  %v814_v0 = vpop.f32.mrb[26].mxu0  ;;  %v855_v55 = vpop.f32.mrb[26].mxu1  ;;  %v2580_v49 = vld [vmem:[#allocation18_spill] sm:$0xff] }
 0x33b   :  { %v1572_v56 = vmul.f32 -1.442695, %v858_v3  ;;  %v815_v57 = vpop.f32.mrb[27].mxu0  ;;  %v856_v46 = vpop.f32.mrb[27].mxu1  ;;  %v1574_v61 = vmul.f32 -1.442695, %v860_v50 }
 0x33c   :  { %v1573_v59 = vmul.f32 -1.442695, %v859_v51  ;;  %v2579_v50 = vld [vmem:[#allocation17_spill] sm:$0xff]  ;;  %v2581_v0 = vld [vmem:[#allocation19_spill] sm:$0xff] }
 0x33d   :  { %1691 = vpow2.f32 %v1572_v56  ;;  %v2582_v56 = vld [vmem:[#allocation20_spill] sm:$0xff] }
 0x33e   :  { %1693 = vpow2.f32 %v1573_v59 }
 0x33f   :  { %1695 = vtanh.f32 %v861_v54 }
 0x340   :  { %1697 = vpow2.f32 %v1574_v61 }
 0x347   :  { %v1692_v63 = vpop.eup %1691 }
 0x348   :  { %v871_v62 = vadd.f32 1.0, %v1692_v63  ;;  %v1694_v4 = vpop.eup %1693 }
 0x349   :  { %v872_v14 = vadd.f32 1.0, %v1694_v4  ;;  %v1696_v34 = vpop.eup %1695 }
 0x34a   :  { %1699 = vrcp.f32 %v871_v62  ;;  %v1698_v1 = vpop.eup %1697 }
 0x34b   :  { %1701 = vrcp.f32 %v872_v14  ;;  %v873_v45 = vadd.f32 1.0, %v1698_v1 }
 0x34d   :  { %1703 = vrcp.f32 %v873_v45 }
 0x354   :  { %v1700_v5 = vpop.eup %1699 }
 0x355   :  { %v882_v42 = vmul.f32 %v1700_v5, %v1696_v34  ;;  %v1702_v25 = vpop.eup %1701 }
 0x356   :  { %v881_v48 = vmul.f32 %v1702_v25, %v2277_v2 }
 0x357   :  { %v1704_v43 = vpop.eup %1703 }
 0x358   :  { %v2319_v41 = vadd.f32 %v882_v42, %v881_v48 }
 0x35a   :  { %1705 = vtanh.f32 %v2319_v41 }
 0x364   :  { %v1706_v47 = vpop.eup %1705 }
 0x365   :  { %v885_v60 = vmul.f32 %v1706_v47, %v1704_v43 }
 0x367   :  { %v893_v58 = vpack.c.bf16 %v885_v60, %v885_v60 }
 0x369   :  { %927 = vmatmul.mubr.bf16.vlgmr.msra.gmra.mrb[28].mxu0 %v893_v58  ;;  %968 = vmatmul.mubr.bf16.vlgmr.msra.gmra.mrb[28].mxu1 %v893_v58 }
 0x36a   :  { %1013 = vmatpush1.bf16.msra.mxu0 %v2006_v8  ;;  %1054 = vmatpush1.bf16.msra.mxu1 %v2009_v9 }
 0x36b   :  { %1014 = vmatprep.subr.bf16.mxu0 %v2013_v10  ;;  %1055 = vmatprep.subr.bf16.mxu1 %v2017_v11 }
 0x36c   :  { %1044 = vmatprep.mubr.bf16.mxu0 %v2577_v44  ;;  %1085 = vmatprep.mubr.bf16.mxu1 %v2577_v44 }
 0x36e   :  { %1015 = vmatpush1.bf16.msra.mxu0 %v2019_v12  ;;  %1056 = vmatpush1.bf16.msra.mxu1 %v2021_v13 }
 0x36f   :  { %1016 = vmatprep.subr.bf16.mxu0 %v2027_v15  ;;  %1057 = vmatprep.subr.bf16.mxu1 %v2030_v16 }
 0x372   :  { %1017 = vmatpush1.bf16.msra.mxu0 %v2033_v17  ;;  %1058 = vmatpush1.bf16.msra.mxu1 %v2035_v18 }
 0x373   :  { %1018 = vmatprep.subr.bf16.mxu0 %v2039_v19  ;;  %1059 = vmatprep.subr.bf16.mxu1 %v2042_v20 }
 0x376   :  { %1019 = vmatpush1.bf16.msra.mxu0 %v2046_v21  ;;  %1060 = vmatpush1.bf16.msra.mxu1 %v2049_v22 }
 0x377   :  { %1020 = vmatprep.subr.bf16.mxu0 %v2054_v23  ;;  %1061 = vmatprep.subr.bf16.mxu1 %v2058_v24 }
 0x37a   :  { %1021 = vmatpush1.bf16.msra.mxu0 %v2061_v26  ;;  %1062 = vmatpush1.bf16.msra.mxu1 %v2065_v27 }
 0x37b   :  { %1022 = vmatprep.subr.bf16.mxu0 %v2067_v28  ;;  %1063 = vmatprep.subr.bf16.mxu1 %v2070_v29 }
 0x37e   :  { %1023 = vmatpush1.bf16.msra.mxu0 %v2075_v30  ;;  %1064 = vmatpush1.bf16.msra.mxu1 %v2077_v31 }
 0x37f   :  { %1024 = vmatprep.subr.bf16.mxu0 %v2082_v32  ;;  %1065 = vmatprep.subr.bf16.mxu1 %v2086_v33 }
 0x382   :  { %1025 = vmatpush1.bf16.msra.mxu0 %v2089_v35  ;;  %1066 = vmatpush1.bf16.msra.mxu1 %v2093_v36 }
 0x383   :  { %1026 = vmatprep.subr.bf16.mxu0 %v2095_v37  ;;  %1067 = vmatprep.subr.bf16.mxu1 %v2098_v38 }
 0x386   :  { %1027 = vmatpush1.bf16.msra.mxu0 %v2103_v39  ;;  %1068 = vmatpush1.bf16.msra.mxu1 %v2108_v40 }
 0x387   :  { %1130 = vmatprep.subr.bf16.mxu0 %v2002_v6  ;;  %1171 = vmatprep.subr.bf16.mxu1 %v2004_v7 }
 0x43c   :  { %v928_v2 = vpop.f32.mrb[28].mxu0  ;;  %v969_v3 = vpop.f32.mrb[28].mxu1 }
 0x43d   :  { %v976_v53 = vadd.f32 %v928_v2, %v2579_v50  ;;  %v978_v51 = vadd.f32 %v969_v3, %v2580_v49  ;;  %v930_v52 = vpop.f32.mrb[29].mxu0  ;;  %v971_v54 = vpop.f32.mrb[29].mxu1 }
 0x43e   :  { %v977_v55 = vadd.f32 %v930_v52, %v2581_v0  ;;  %v979_v57 = vadd.f32 %v971_v54, %v2582_v56  ;;  %v932_v46 = vpop.f32.mrb[30].mxu0  ;;  %v973_v59 = vpop.f32.mrb[30].mxu1 }
 0x43f   :  { %v1575_v61 = vmul.f32 -1.442695, %v976_v53  ;;  %v933_v63 = vpop.f32.mrb[31].mxu0  ;;  %v974_v62 = vpop.f32.mrb[31].mxu1  ;;  %v1577_v7 = vmul.f32 -1.442695, %v978_v51 }
 0x440   :  { %v1576_v6 = vmul.f32 -1.442695, %v977_v55 }
 0x441   :  { %1707 = vpow2.f32 %v1575_v61 }
 0x442   :  { %1709 = vpow2.f32 %v1576_v6  ;;  %v2410_v6 = vld [vmem:[#allocation11] ss:$16 sps:$4 sm:$0xff]  }
 0x443   :  { %1711 = vtanh.f32 %v979_v57 }
 0x444   :  { %1713 = vpow2.f32 %v1577_v7  ;;  %v2413_v7 = vld [vmem:[#allocation11 + $0x8] ss:$16 sps:$4 sm:$0xff]  }
 0x44b   :  { %v1708_v4 = vpop.eup %1707 }
 0x44c   :  { %v989_v14 = vadd.f32 1.0, %v1708_v4  ;;  %v1710_v34 = vpop.eup %1709  ;;  %v2416_v4 = vld [vmem:[#allocation11 + $0x24] ss:$16 sps:$4 sm:$0xff]  }
 0x44d   :  { %v990_v1 = vadd.f32 1.0, %v1710_v34  ;;  %v1712_v5 = vpop.eup %1711  ;;  %v2424_v34 = vld [vmem:[#allocation11 + $0x20] ss:$16 sps:$4 sm:$0xff]  }
 0x44e   :  { %1715 = vrcp.f32 %v989_v14  ;;  %v1714_v42 = vpop.eup %1713  ;;  %v2419_v14 = vld [vmem:[#allocation11 + $0x2c] ss:$16 sps:$4 sm:$0xff]  }
 0x44f   :  { %1717 = vrcp.f32 %v990_v1  ;;  %v991_v43 = vadd.f32 1.0, %v1714_v42  ;;  %v2427_v1 = vld [vmem:[#allocation11 + $0x28] ss:$16 sps:$4 sm:$0xff]   ;;  %v2433_v42 = vld [vmem:[#allocation11 + $0x4c] ss:$16 sps:$4 sm:$0xff]  }
 0x451   :  { %1719 = vrcp.f32 %v991_v43  ;;  %v2445_v43 = vld [vmem:[#allocation11 + $0x6c] ss:$16 sps:$4 sm:$0xff]  }
 0x458   :  { %v1716_v25 = vpop.eup %1715 }
 0x459   :  { %v1000_v45 = vmul.f32 %v1716_v25, %v1712_v5  ;;  %v1718_v48 = vpop.eup %1717  ;;  %v2430_v5 = vld [vmem:[#allocation11 + $0x44] ss:$16 sps:$4 sm:$0xff]   ;;  %v2436_v25 = vld [vmem:[#allocation11 + $0x40] ss:$16 sps:$4 sm:$0xff]  }
 0x45a   :  { %v999_v47 = vmul.f32 %v1718_v48, %v2319_v41  ;;  %v2442_v48 = vld [vmem:[#allocation11 + $0x64] ss:$16 sps:$4 sm:$0xff]  }
 0x45b   :  { %v1720_v58 = vpop.eup %1719 }
 0x45c   :  { %v2361_v60 = vadd.f32 %v1000_v45, %v999_v47  ;;  %v2439_v45 = vld [vmem:[#allocation11 + $0x48] ss:$16 sps:$4 sm:$0xff]   ;;  %v2448_v47 = vld [vmem:[#allocation11 + $0x60] ss:$16 sps:$4 sm:$0xff]  }
 0x45e   :  { %1721 = vtanh.f32 %v2361_v60 }
 0x468   :  { %v1722_v2 = vpop.eup %1721 }
 0x469   :  { %v1003_v3 = vmul.f32 %v1722_v2, %v1720_v58  ;;  %v2454_v58 = vld [vmem:[#allocation11 + $0x84] ss:$16 sps:$4 sm:$0xff]   ;;  %v2457_v2 = vld [vmem:[#allocation11 + $0x8c] ss:$16 sps:$4 sm:$0xff]  }
 0x46b   :  { %v1011_v50 = vpack.c.bf16 %v1003_v3, %v1003_v3  ;;  %v2460_v3 = vld [vmem:[#allocation11 + $0x80] ss:$16 sps:$4 sm:$0xff]  }
 0x46d   :  { %1045 = vmatmul.mubr.bf16.vlgmr.msra.gmra.mrb[32].mxu0 %v1011_v50  ;;  %1086 = vmatmul.mubr.bf16.vlgmr.msra.gmra.mrb[32].mxu1 %v1011_v50  ;;  %v2463_v50 = vld [vmem:[#allocation11 + $0x88] ss:$16 sps:$4 sm:$0xff]  }
 0x46e   :  { %1131 = vmatpush1.bf16.msra.mxu0 %v2006_v8  ;;  %1172 = vmatpush1.bf16.msra.mxu1 %v2009_v9  ;;  %v2396_v8 = vld [vmem:[#allocation11 + $0x4] ss:$16 sps:$4 sm:$0xff]   ;;  %v2399_v9 = vld [vmem:[#allocation11 + $0xc] ss:$16 sps:$4 sm:$0xff]  }
 0x46f   :  { %1132 = vmatprep.subr.bf16.mxu0 %v2013_v10  ;;  %1173 = vmatprep.subr.bf16.mxu1 %v2017_v11 }
 0x470   :  { %1162 = vmatprep.mubr.bf16.mxu0 %v2577_v44  ;;  %1203 = vmatprep.mubr.bf16.mxu1 %v2577_v44 }
 0x472   :  { %1133 = vmatpush1.bf16.msra.mxu0 %v2019_v12  ;;  %1174 = vmatpush1.bf16.msra.mxu1 %v2021_v13  ;;  %v2583_v12 = vld [vmem:[#allocation21_spill] sm:$0xff] }
 0x473   :  { %1134 = vmatprep.subr.bf16.mxu0 %v2027_v15  ;;  %1175 = vmatprep.subr.bf16.mxu1 %v2030_v16  ;;  %v2584_v15 = vld [vmem:[#allocation22_spill] sm:$0xff] }
 0x476   :  { %1135 = vmatpush1.bf16.msra.mxu0 %v2033_v17  ;;  %1176 = vmatpush1.bf16.msra.mxu1 %v2035_v18 }
 0x477   :  { %1136 = vmatprep.subr.bf16.mxu0 %v2039_v19  ;;  %1177 = vmatprep.subr.bf16.mxu1 %v2042_v20  ;;  %v2585_v19 = vld [vmem:[#allocation23_spill] sm:$0xff] }
 0x47a   :  { %1137 = vmatpush1.bf16.msra.mxu0 %v2046_v21  ;;  %1178 = vmatpush1.bf16.msra.mxu1 %v2049_v22  ;;  %v2586_v21 = vld [vmem:[#allocation24_spill] sm:$0xff] }
 0x47b   :  { %1138 = vmatprep.subr.bf16.mxu0 %v2054_v23  ;;  %1179 = vmatprep.subr.bf16.mxu1 %v2058_v24 }
 0x47e   :  { %1139 = vmatpush1.bf16.msra.mxu0 %v2061_v26  ;;  %1180 = vmatpush1.bf16.msra.mxu1 %v2065_v27 }
 0x47f   :  { %1140 = vmatprep.subr.bf16.mxu0 %v2067_v28  ;;  %1181 = vmatprep.subr.bf16.mxu1 %v2070_v29 }
 0x482   :  { %1141 = vmatpush1.bf16.msra.mxu0 %v2075_v30  ;;  %1182 = vmatpush1.bf16.msra.mxu1 %v2077_v31 }
 0x483   :  { %1142 = vmatprep.subr.bf16.mxu0 %v2082_v32  ;;  %1183 = vmatprep.subr.bf16.mxu1 %v2086_v33 }
 0x486   :  { %1143 = vmatpush1.bf16.msra.mxu0 %v2089_v35  ;;  %1184 = vmatpush1.bf16.msra.mxu1 %v2093_v36 }
 0x487   :  { %1144 = vmatprep.subr.bf16.mxu0 %v2095_v37  ;;  %1185 = vmatprep.subr.bf16.mxu1 %v2098_v38 }
 0x48a   :  { %1145 = vmatpush1.bf16.msra.mxu0 %v2103_v39  ;;  %1186 = vmatpush1.bf16.msra.mxu1 %v2108_v40 }
 0x48b   :  { %1248 = vmatprep.subr.bf16.mxu0 %v2396_v8  ;;  %1289 = vmatprep.subr.bf16.mxu1 %v2399_v9 }
 0x540   :  { %v1046_v10 = vpop.f32.mrb[32].mxu0  ;;  %v1087_v11 = vpop.f32.mrb[32].mxu1 }
 0x541   :  { %v1094_v13 = vadd.f32 %v1046_v10, %v2583_v12  ;;  %v1096_v16 = vadd.f32 %v1087_v11, %v2584_v15  ;;  %v1048_v17 = vpop.f32.mrb[33].mxu0  ;;  %v1089_v18 = vpop.f32.mrb[33].mxu1  ;;  %v2466_v10 = vld [vmem:[#allocation11 + $0xa4] ss:$16 sps:$4 sm:$0xff]   ;;  %v2469_v11 = vld [vmem:[#allocation11 + $0xac] ss:$16 sps:$4 sm:$0xff]  }
 0x542   :  { %v1095_v20 = vadd.f32 %v1048_v17, %v2585_v19  ;;  %v1097_v22 = vadd.f32 %v1089_v18, %v2586_v21  ;;  %v1050_v23 = vpop.f32.mrb[34].mxu0  ;;  %v1091_v24 = vpop.f32.mrb[34].mxu1  ;;  %v2472_v12 = vld [vmem:[#allocation11 + $0xa0] ss:$16 sps:$4 sm:$0xff]   ;;  %v2588_v17 = vld [vmem:[#allocation26_spill] sm:$0xff] }
 0x543   :  { %v1578_v26 = vmul.f32 -1.442695, %v1094_v13  ;;  %v1051_v27 = vpop.f32.mrb[35].mxu0  ;;  %v1092_v28 = vpop.f32.mrb[35].mxu1  ;;  %v1580_v30 = vmul.f32 -1.442695, %v1096_v16 }
 0x544   :  { %v1579_v29 = vmul.f32 -1.442695, %v1095_v20  ;;  %v2475_v13 = vld [vmem:[#allocation11 + $0xa8] ss:$16 sps:$4 sm:$0xff]   ;;  %v2587_v16 = vld [vmem:[#allocation25_spill] sm:$0xff]  ;;  %v2589_v19 = vld [vmem:[#allocation27_spill] sm:$0xff] }
 0x545   :  { %1723 = vpow2.f32 %v1578_v26  ;;  %v2590_v20 = vld [vmem:[#allocation28_spill] sm:$0xff] }
 0x546   :  { %1725 = vpow2.f32 %v1579_v29 }
 0x547   :  { %1727 = vtanh.f32 %v1097_v22 }
 0x548   :  { %1729 = vpow2.f32 %v1580_v30 }
 0x54f   :  { %v1724_v31 = vpop.eup %1723 }
 0x550   :  { %v1107_v41 = vadd.f32 1.0, %v1724_v31  ;;  %v1726_v53 = vpop.eup %1725 }
 0x551   :  { %v1108_v49 = vadd.f32 1.0, %v1726_v53  ;;  %v1728_v51 = vpop.eup %1727 }
 0x552   :  { %1731 = vrcp.f32 %v1107_v41  ;;  %v1730_v52 = vpop.eup %1729 }
 0x553   :  { %1733 = vrcp.f32 %v1108_v49  ;;  %v1109_v56 = vadd.f32 1.0, %v1730_v52 }
 0x555   :  { %1735 = vrcp.f32 %v1109_v56 }
 0x55c   :  { %v1732_v54 = vpop.eup %1731 }
 0x55d   :  { %v1118_v0 = vmul.f32 %v1732_v54, %v1728_v51  ;;  %v1734_v55 = vpop.eup %1733 }
 0x55e   :  { %v1117_v57 = vmul.f32 %v1734_v55, %v2361_v60  ;;  %v2451_v60 = vld [vmem:[#allocation11 + $0x68] ss:$16 sps:$4 sm:$0xff]  }
 0x55f   :  { %v1736_v59 = vpop.eup %1735 }
 0x560   :  { %v2407_v46 = vadd.f32 %v1118_v0, %v1117_v57  ;;  %v1812_v57 = vld [vmem:[#allocation11 + $0xcc] ss:$16 sps:$4 sm:$0xff]  }
 0x562   :  { %1737 = vtanh.f32 %v2407_v46 }
 0x56c   :  { %v1738_v61 = vpop.eup %1737 }
 0x56d   :  { %v1121_v63 = vmul.f32 %v1738_v61, %v1736_v59  ;;  %v1814_v59 = vld [vmem:[#allocation11 + $0xc8] ss:$16 sps:$4 sm:$0xff]   ;;  %v1815_v61 = vld [vmem:[#allocation11 + $0xe4] ss:$16 sps:$4 sm:$0xff]  }
 0x56f   :  { %v1129_v62 = vpack.c.bf16 %v1121_v63, %v1121_v63  ;;  %v1816_v63 = vld [vmem:[#allocation11 + $0xec] ss:$16 sps:$4 sm:$0xff]  }
 0x571   :  { %1163 = vmatmul.mubr.bf16.vlgmr.msra.gmra.mrb[36].mxu0 %v1129_v62  ;;  %1204 = vmatmul.mubr.bf16.vlgmr.msra.gmra.mrb[36].mxu1 %v1129_v62  ;;  %v1817_v62 = vld [vmem:[#allocation11 + $0xe0] ss:$16 sps:$4 sm:$0xff]  }
 0x572   :  { %1249 = vmatpush1.bf16.msra.mxu0 %v2410_v6  ;;  %1290 = vmatpush1.bf16.msra.mxu1 %v2413_v7 }
 0x573   :  { %1250 = vmatprep.subr.bf16.mxu0 %v2416_v4  ;;  %1291 = vmatprep.subr.bf16.mxu1 %v2419_v14 }
 0x574   :  { %1280 = vmatprep.mubr.bf16.mxu0 %v2577_v44  ;;  %1321 = vmatprep.mubr.bf16.mxu1 %v2577_v44 }
 0x576   :  { %1251 = vmatpush1.bf16.msra.mxu0 %v2424_v34  ;;  %1292 = vmatpush1.bf16.msra.mxu1 %v2427_v1 }
 0x577   :  { %1252 = vmatprep.subr.bf16.mxu0 %v2430_v5  ;;  %1293 = vmatprep.subr.bf16.mxu1 %v2433_v42 }
 0x57a   :  { %1253 = vmatpush1.bf16.msra.mxu0 %v2436_v25  ;;  %1294 = vmatpush1.bf16.msra.mxu1 %v2439_v45 }
 0x57b   :  { %1254 = vmatprep.subr.bf16.mxu0 %v2442_v48  ;;  %1295 = vmatprep.subr.bf16.mxu1 %v2445_v43 }
 0x57e   :  { %1255 = vmatpush1.bf16.msra.mxu0 %v2448_v47  ;;  %1296 = vmatpush1.bf16.msra.mxu1 %v2451_v60 }
 0x57f   :  { %1256 = vmatprep.subr.bf16.mxu0 %v2454_v58  ;;  %1297 = vmatprep.subr.bf16.mxu1 %v2457_v2 }
 0x582   :  { %1257 = vmatpush1.bf16.msra.mxu0 %v2460_v3  ;;  %1298 = vmatpush1.bf16.msra.mxu1 %v2463_v50 }
 0x583   :  { %1258 = vmatprep.subr.bf16.mxu0 %v2466_v10  ;;  %1299 = vmatprep.subr.bf16.mxu1 %v2469_v11 }
 0x586   :  { %1259 = vmatpush1.bf16.msra.mxu0 %v2472_v12  ;;  %1300 = vmatpush1.bf16.msra.mxu1 %v2475_v13 }
 0x587   :  { %1260 = vmatprep.subr.bf16.mxu0 %v2082_v32  ;;  %1301 = vmatprep.subr.bf16.mxu1 %v2086_v33 }
 0x58a   :  { %1261 = vmatpush1.bf16.msra.mxu0 %v2089_v35  ;;  %1302 = vmatpush1.bf16.msra.mxu1 %v2093_v36 }
 0x58b   :  { %1262 = vmatprep.subr.bf16.mxu0 %v2095_v37  ;;  %1303 = vmatprep.subr.bf16.mxu1 %v2098_v38 }
 0x58e   :  { %1263 = vmatpush1.bf16.msra.mxu0 %v2103_v39  ;;  %1304 = vmatpush1.bf16.msra.mxu1 %v2108_v40 }
 0x58f   :  { %1366 = vmatprep.subr.bf16.mxu0 %v2396_v8  ;;  %1407 = vmatprep.subr.bf16.mxu1 %v2399_v9 }
 0x644   :  { %v1164_v15 = vpop.f32.mrb[36].mxu0  ;;  %v1205_v32 = vpop.f32.mrb[36].mxu1 }
 0x645   :  { %v1212_v33 = vadd.f32 %v1164_v15, %v2587_v16  ;;  %v1214_v35 = vadd.f32 %v1205_v32, %v2588_v17  ;;  %v1166_v18 = vpop.f32.mrb[37].mxu0  ;;  %v1207_v36 = vpop.f32.mrb[37].mxu1 }
 0x646   :  { %v1213_v37 = vadd.f32 %v1166_v18, %v2589_v19  ;;  %v1215_v38 = vadd.f32 %v1207_v36, %v2590_v20  ;;  %v1168_v21 = vpop.f32.mrb[38].mxu0  ;;  %v1209_v39 = vpop.f32.mrb[38].mxu1 }
 0x647   :  { %v1581_v22 = vmul.f32 -1.442695, %v1212_v33  ;;  %v1169_v40 = vpop.f32.mrb[39].mxu0  ;;  %v1210_v23 = vpop.f32.mrb[39].mxu1  ;;  %v1583_v9 = vmul.f32 -1.442695, %v1214_v35 }
 0x648   :  { %v1582_v8 = vmul.f32 -1.442695, %v1213_v37  ;;  %v2595_v23 = vld [vmem:[#allocation33_spill] sm:$0xff] }
 0x649   :  { %1739 = vpow2.f32 %v1581_v22 }
 0x64a   :  { %1741 = vpow2.f32 %v1582_v8 }
 0x64b   :  { %1743 = vtanh.f32 %v1215_v38 }
 0x64c   :  { %1745 = vpow2.f32 %v1583_v9  ;;  %v2596_v9 = vld [vmem:[#allocation34_spill] sm:$0xff] }
 0x653   :  { %v1740_v24 = vpop.eup %1739 }
 0x654   :  { %v1225_v26 = vadd.f32 1.0, %v1740_v24  ;;  %v1742_v27 = vpop.eup %1741 }
 0x655   :  { %v1226_v28 = vadd.f32 1.0, %v1742_v27  ;;  %v1744_v29 = vpop.eup %1743 }
 0x656   :  { %1747 = vrcp.f32 %v1225_v26  ;;  %v1746_v30 = vpop.eup %1745 }
 0x657   :  { %1749 = vrcp.f32 %v1226_v28  ;;  %v1227_v49 = vadd.f32 1.0, %v1746_v30  ;;  %v2597_v28 = vld [vmem:[#allocation35_spill] sm:$0xff]  ;;  %v2598_v30 = vld [vmem:[#allocation36_spill] sm:$0xff] }
 0x659   :  { %1751 = vrcp.f32 %v1227_v49 }
 0x660   :  { %v1748_v31 = vpop.eup %1747 }
 0x661   :  { %v1236_v41 = vmul.f32 %v1748_v31, %v1744_v29  ;;  %v1750_v53 = vpop.eup %1749 }
 0x662   :  { %v1235_v51 = vmul.f32 %v1750_v53, %v2407_v46  ;;  %v1813_v46 = vld [vmem:[#allocation11 + $0xc0] ss:$16 sps:$4 sm:$0xff]  }
 0x663   :  { %v1752_v54 = vpop.eup %1751 }
 0x664   :  { %v2493_v52 = vadd.f32 %v1236_v41, %v1235_v51 }
 0x666   :  { %1753 = vtanh.f32 %v2493_v52 }
 0x670   :  { %v1754_v0 = vpop.eup %1753 }
 0x671   :  { %v1239_v55 = vmul.f32 %v1754_v0, %v1752_v54 }
 0x673   :  { %v1247_v56 = vpack.c.bf16 %v1239_v55, %v1239_v55 }
 0x675   :  { %1281 = vmatmul.mubr.bf16.vlgmr.msra.gmra.mrb[40].mxu0 %v1247_v56  ;;  %1322 = vmatmul.mubr.bf16.vlgmr.msra.gmra.mrb[40].mxu1 %v1247_v56 }
 0x676   :  { %1367 = vmatpush1.bf16.msra.mxu0 %v2410_v6  ;;  %1408 = vmatpush1.bf16.msra.mxu1 %v2413_v7  ;;  %v1818_v6 = vld [vmem:[#allocation11 + $0xe8] ss:$16 sps:$4 sm:$0xff]  }
 0x677   :  { %1368 = vmatprep.subr.bf16.mxu0 %v2416_v4  ;;  %1409 = vmatprep.subr.bf16.mxu1 %v2419_v14  ;;  %v2591_v14 = vld [vmem:[#allocation29_spill] sm:$0xff] }
 0x678   :  { %1398 = vmatprep.mubr.bf16.mxu0 %v2577_v44  ;;  %1439 = vmatprep.mubr.bf16.mxu1 %v2577_v44  ;;  %v1811_v44 = vld [vmem:[#allocation11 + $0xc4] ss:$16 sps:$4 sm:$0xff]  }
 0x67a   :  { %1369 = vmatpush1.bf16.msra.mxu0 %v2424_v34  ;;  %1410 = vmatpush1.bf16.msra.mxu1 %v2427_v1  ;;  %v2592_v1 = vld [vmem:[#allocation30_spill] sm:$0xff] }
 0x67b   :  { %1370 = vmatprep.subr.bf16.mxu0 %v2430_v5  ;;  %1411 = vmatprep.subr.bf16.mxu1 %v2433_v42 }
 0x67e   :  { %1371 = vmatpush1.bf16.msra.mxu0 %v2436_v25  ;;  %1412 = vmatpush1.bf16.msra.mxu1 %v2439_v45  ;;  %v2593_v45 = vld [vmem:[#allocation31_spill] sm:$0xff] }
 0x67f   :  { %1372 = vmatprep.subr.bf16.mxu0 %v2442_v48  ;;  %1413 = vmatprep.subr.bf16.mxu1 %v2445_v43  ;;  %v2594_v43 = vld [vmem:[#allocation32_spill] sm:$0xff] }
 0x682   :  { %1373 = vmatpush1.bf16.msra.mxu0 %v2448_v47  ;;  %1414 = vmatpush1.bf16.msra.mxu1 %v2451_v60 }
 0x683   :  { %1374 = vmatprep.subr.bf16.mxu0 %v2454_v58  ;;  %1415 = vmatprep.subr.bf16.mxu1 %v2457_v2 }
 0x686   :  { %1375 = vmatpush1.bf16.msra.mxu0 %v2460_v3  ;;  %1416 = vmatpush1.bf16.msra.mxu1 %v2463_v50 }
 0x687   :  { %1376 = vmatprep.subr.bf16.mxu0 %v2466_v10  ;;  %1417 = vmatprep.subr.bf16.mxu1 %v2469_v11 }
 0x68a   :  { %1377 = vmatpush1.bf16.msra.mxu0 %v2472_v12  ;;  %1418 = vmatpush1.bf16.msra.mxu1 %v2475_v13 }
 0x68b   :  { %1378 = vmatprep.subr.bf16.mxu0 %v1811_v44  ;;  %1419 = vmatprep.subr.bf16.mxu1 %v1812_v57 }
 0x68e   :  { %1379 = vmatpush1.bf16.msra.mxu0 %v1813_v46  ;;  %1420 = vmatpush1.bf16.msra.mxu1 %v1814_v59 }
 0x68f   :  { %1380 = vmatprep.subr.bf16.mxu0 %v1815_v61  ;;  %1421 = vmatprep.subr.bf16.mxu1 %v1816_v63 }
 0x692   :  { %1381 = vmatpush1.bf16.msra.mxu0 %v1817_v62  ;;  %1422 = vmatpush1.bf16.msra.mxu1 %v1818_v6 }
 0x748   :  { %v1282_v7 = vpop.f32.mrb[40].mxu0  ;;  %v1323_v4 = vpop.f32.mrb[40].mxu1 }
 0x749   :  { %v1330_v34 = vadd.f32 %v1282_v7, %v2591_v14  ;;  %v1332_v5 = vadd.f32 %v1323_v4, %v2592_v1  ;;  %v1284_v42 = vpop.f32.mrb[41].mxu0  ;;  %v1325_v25 = vpop.f32.mrb[41].mxu1  ;;  %v1590_v1 = vld [vmem:[%s2551_s4] ss:$0 sm:$0xff] }
 0x74a   :  { %v1331_v48 = vadd.f32 %v1284_v42, %v2593_v45  ;;  %v1333_v47 = vadd.f32 %v1325_v25, %v2594_v43  ;;  %v1286_v60 = vpop.f32.mrb[42].mxu0  ;;  %v1327_v58 = vpop.f32.mrb[42].mxu1  ;;  %v1492_v25 = vstv %s2552_s5 }
 0x74b   :  { %v1584_v2 = vmul.f32 -1.442695, %v1330_v34  ;;  %v1287_v3 = vpop.f32.mrb[43].mxu0  ;;  %v1328_v50 = vpop.f32.mrb[43].mxu1  ;;  %v1586_v11 = vmul.f32 -1.442695, %v1332_v5 }
 0x74c   :  { %v1585_v10 = vmul.f32 -1.442695, %v1331_v48 }
 0x74d   :  { %1755 = vpow2.f32 %v1584_v2 }
 0x74e   :  { %1757 = vpow2.f32 %v1585_v10 }
 0x74f   :  { %1759 = vtanh.f32 %v1333_v47 }
 0x750   :  { %1761 = vpow2.f32 %v1586_v11 }
 0x757   :  { %v1756_v12 = vpop.eup %1755 }
 0x758   :  { %v1343_v13 = vadd.f32 1.0, %v1756_v12  ;;  %v1758_v15 = vpop.eup %1757 }
 0x759   :  { %v1344_v32 = vadd.f32 1.0, %v1758_v15  ;;  %v1760_v16 = vpop.eup %1759 }
 0x75a   :  { %1763 = vrcp.f32 %v1343_v13  ;;  %v1762_v33 = vpop.eup %1761 }
 0x75b   :  { %1765 = vrcp.f32 %v1344_v32  ;;  %v1345_v36 = vadd.f32 1.0, %v1762_v33 }
 0x75d   :  { %1767 = vrcp.f32 %v1345_v36 }
 0x764   :  { %v1764_v17 = vpop.eup %1763 }
 0x765   :  { %v1354_v35 = vmul.f32 %v1764_v17, %v1760_v16  ;;  %v1766_v18 = vpop.eup %1765 }
 0x766   :  { %v1353_v19 = vmul.f32 %v1766_v18, %v2493_v52 }
 0x767   :  { %v1768_v20 = vpop.eup %1767 }
 0x768   :  { %v1355_v37 = vadd.f32 %v1354_v35, %v1353_v19 }
 0x76a   :  { %1769 = vtanh.f32 %v1355_v37 }
 0x774   :  { %v1770_v38 = vpop.eup %1769 }
 0x775   :  { %v1357_v21 = vmul.f32 %v1770_v38, %v1768_v20 }
 0x777   :  { %v1365_v39 = vpack.c.bf16 %v1357_v21, %v1357_v21 }
 0x779   :  { %1399 = vmatmul.mubr.bf16.vlgmr.msra.gmra.mrb[44].mxu0 %v1365_v39  ;;  %1440 = vmatmul.mubr.bf16.vlgmr.msra.gmra.mrb[44].mxu1 %v1365_v39 }
 0x84c   :  { %v1400_v22 = vpop.f32.mrb[44].mxu0  ;;  %v1441_v40 = vpop.f32.mrb[44].mxu1 }
 0x84d   :  { %v1448_v8 = vadd.f32 %v1400_v22, %v2595_v23  ;;  %v1450_v24 = vadd.f32 %v1441_v40, %v2596_v9  ;;  %v1402_v26 = vpop.f32.mrb[45].mxu0  ;;  %v1443_v27 = vpop.f32.mrb[45].mxu1 }
 0x84e   :  { %v1449_v29 = vadd.f32 %v1402_v26, %v2597_v28  ;;  %v1451_v31 = vadd.f32 %v1443_v27, %v2598_v30  ;;  %v1404_v41 = vpop.f32.mrb[46].mxu0  ;;  %v1445_v53 = vpop.f32.mrb[46].mxu1 }
 0x84f   :  { %v1587_v49 = vmul.f32 -1.442695, %v1448_v8  ;;  %v1405_v51 = vpop.f32.mrb[47].mxu0  ;;  %v1446_v52 = vpop.f32.mrb[47].mxu1  ;;  %v1589_v0 = vmul.f32 -1.442695, %v1450_v24 }
 0x850   :  { %v1588_v54 = vmul.f32 -1.442695, %v1449_v29 }
 0x851   :  { %1771 = vpow2.f32 %v1587_v49 }
 0x852   :  { %1773 = vpow2.f32 %v1588_v54 }
 0x853   :  { %1775 = vtanh.f32 %v1451_v31 }
 0x854   :  { %1777 = vpow2.f32 %v1589_v0 }
 0x85b   :  { %v1772_v55 = vpop.eup %1771 }
 0x85c   :  { %v1461_v56 = vadd.f32 1.0, %v1772_v55  ;;  %v1774_v44 = vpop.eup %1773 }
 0x85d   :  { %v1462_v57 = vadd.f32 1.0, %v1774_v44  ;;  %v1776_v46 = vpop.eup %1775 }
 0x85e   :  { %1779 = vrcp.f32 %v1461_v56  ;;  %v1778_v59 = vpop.eup %1777 }
 0x85f   :  { %1781 = vrcp.f32 %v1462_v57  ;;  %v1463_v6 = vadd.f32 1.0, %v1778_v59 }
 0x861   :  { %1783 = vrcp.f32 %v1463_v6 }
 0x868   :  { %v1780_v61 = vpop.eup %1779 }
 0x869   :  { %v1472_v63 = vmul.f32 %v1780_v61, %v1776_v46  ;;  %v1782_v62 = vpop.eup %1781 }
 0x86a   :  { %v1471_v7 = vmul.f32 %v1782_v62, %v1355_v37 }
 0x86b   :  { %v1784_v14 = vpop.eup %1783 }
 0x86c   :  { %v1473_v4 = vadd.f32 %v1472_v63, %v1471_v7 }
 0x86e   :  { %1785 = vtanh.f32 %v1473_v4 }
 0x878   :  { %v1786_v34 = vpop.eup %1785 }
 0x879   :  { %v1475_v5 = vmul.f32 %v1786_v34, %v1784_v14 }
 0x87b   :  { %v1488_v42 = vmul.f32 %v1590_v1, %v1475_v5 }
 0x87d   :  { %1489 = vadd.xlane.f32.xlu0 %v1488_v42 }
 0x90a   :  { %v1490_v45 = vpop.xlane.xlu0 %1489 }
 0x90b   :  { %v1493_v48 = vadd.f32 %v1492_v25, %v1490_v45 }
 0x90d   :  { %1494 = vst [vmem:[#allocation12] sm:$0xff] %v1493_v48 }
 0x90e   :  { %1896 = shalt.err (!%p1893_p0)
}
 0x90f   :  { %s1897_s19 = scalar_lea.hbm %s2553_s6, 128 }
 0x910   :  { %p1898_p1 = scmp.ne.s32.totalorder %s2553_s6, %s1897_s19  ;;  %p1901_p2 = scmp.lt.u32.totalorder %s1897_s19, %s2553_s6 }
 0x912   :  { %p1903_p3 = pnand %p1901_p2, %p1898_p1 }
 0x914   :  { %1906 = shalt.err (!%p1903_p3)
}
 0x915   :  { %1504 = dma.vmem_to_hbm [thread:$0]  %s1502_s16, 128, %s2553_s6, [#allocation8]  }
 0x916   :  { %1911 = dma.done.wait [#allocation8], 128  }
 0x917   :  { %1912 = vsyncadd [#allocation8], 4294967168 }
 0x918   :  { %1508 = vsyncpa [#allocation7], 1 }
 0x919   :  { %1509 = vsyncpa [#allocation10], 1 }
 0x91a   :  { %1510 = vsyncpa [#allocation8], 1 }

</bundles_post_ra>
